<compile_context>
chip_gen: v5e
topology: v5e:2x2
jax: 0.10.0
libtpu: 0.0.40
codegen_flags: <defaults>
</compile_context>

<pallas_src>
import jax
import jax.numpy as jnp
from jax import lax
from jax.experimental import pallas as pl
from jax.experimental.pallas import tpu as pltpu


def graph_prop_kernel(gidx_ref, sidx_ref, ns_ref, pq_ref, b1_ref,
                      w2c_ref, b2c_ref, wna_ref, wnb_ref, bn_ref,
                      out_ref, acc_ref):
    core = pl.program_id(0)
    step = pl.program_id(1)
    last = pl.num_programs(1) - 1

    @pl.when(step == 0)
    def _():
        acc_ref[...] = jnp.zeros_like(acc_ref)

    te = gidx_ref.shape[0]
    n_nodes = ns_ref.shape[0]
    m = acc_ref.shape[1]

    # --- Fused gather + first linear (single MXU push, K = 2N) ------------
    # oh2[e, l] = 1 iff l == from[e] (l < N) or l == to[e] + N (l >= N).
    # Padded edges carry -1 in both columns -> all-zero rows.
    gidx = gidx_ref[...]                                              # [TE, 2]
    lane2n = lax.broadcasted_iota(jnp.int32, (te, 2 * n_nodes), 1)
    oh2 = ((lane2n == gidx[:, 0:1]).astype(jnp.float32)
           + (lane2n == gidx[:, 1:2]).astype(jnp.float32))            # [TE, 2N]
    h = jnp.maximum(
        jnp.dot(oh2, pq_ref[...], preferred_element_type=jnp.float32)
        + b1_ref[...],
        0.0)                                                          # [TE, 2H]

    # --- Fused forward+reverse second linear (block-diagonal weights) -----
    # Forward messages live in lanes [:M], reverse messages in lanes [M:].
    msg = jnp.dot(h, w2c_ref[...], preferred_element_type=jnp.float32) + b2c_ref[...]

    # --- Scatter (unsorted segment sum), one-hots built in [N, TE] layout --
    sidx = sidx_ref[...]                                              # [2, TE]
    node_sub = lax.broadcasted_iota(jnp.int32, (n_nodes, te), 0)
    ohT_to = (node_sub == sidx[0:1, :]).astype(jnp.float32)           # [N, TE]
    ohT_from = (node_sub == sidx[1:2, :]).astype(jnp.float32)         # [N, TE]
    acc_ref[...] += (
        jnp.dot(ohT_to, msg[:, :m], preferred_element_type=jnp.float32)
        + jnp.dot(ohT_from, msg[:, m:], preferred_element_type=jnp.float32))

    # --- Per-core partial node update on this core's last edge tile --------
    @pl.when(step == last)
    def _():
        out_ref[...] = jnp.dot(acc_ref[...], wna_ref[...],
                               preferred_element_type=jnp.float32)

    # Core 0 carries the residual / node-state part of the update exactly once
    # (the wrapper sums the per-core partial outputs).
    @pl.when(jnp.logical_and(step == last, core == 0))
    def _():
        ns = ns_ref[...]
        out_ref[...] += (
            ns
            + jnp.dot(ns, wnb_ref[...], preferred_element_type=jnp.float32)
            + bn_ref[...])


def _round_up(x, k):
    return (x + k - 1) // k * k


def graph_prop_layer(node_states, from_idx, to_idx, params, *,
                     edge_tile=512, num_cores=1):
    """node_states: [N, D] f32; from_idx/to_idx: [E] int. Returns [N, D] f32.

    num_cores: set to 2 on v7x to split edge tiles across both TensorCores
    (leading 'parallel' grid axis); leave at 1 on v5e/v6e.
    """
    f32 = jnp.float32
    node_states = node_states.astype(f32)
    n_nodes, d = node_states.shape
    n_edges = from_idx.shape[0]
    h = params["w1f"].shape[1]
    m = params["w2f"].shape[1]

    # Edge-tile size: multiple of 128 (lane alignment for the one-hots); per
    # tile the one-hot temporaries cost ~4*TE*N*4 B, so TE=512-1024 is fine
    # for small N.  Padded edges use index -1 (dropped by the one-hots).
    per_core_edges = (n_edges + num_cores - 1) // num_cores
    te = min(_round_up(edge_tile, 128), _round_up(per_core_edges, 128))
    e_pad = _round_up(n_edges, te * num_cores)
    tiles_per_core = e_pad // (te * num_cores)
    pad = e_pad - n_edges

    fr = from_idx.astype(jnp.int32)
    to = to_idx.astype(jnp.int32)
    to_sh = to + n_nodes                    # shift BEFORE padding: pads stay -1
    if pad:
        fr = jnp.pad(fr, (0, pad), constant_values=-1)
        to = jnp.pad(to, (0, pad), constant_values=-1)
        to_sh = jnp.pad(to_sh, (0, pad), constant_values=-1)
    gather_idx = jnp.stack([fr, to_sh], axis=1)    # [E_pad, 2] (gather layout)
    scatter_idx = jnp.stack([to, fr], axis=0)      # [2, E_pad] (scatter layout)

    # Fuse forward/reverse message nets:
    #   h   = relu(fs @ w1a + ts @ w1b + [b1f|b1r])
    #       = relu([oh_from|oh_to] @ [ns@w1a ; ns@w1b] + b1c)   (gather fused)
    #   msg = h @ [[w2f, 0],[0, w2r]] + [b2f|b2r]
    w1f, w1r = params["w1f"].astype(f32), params["w1r"].astype(f32)
    w2f, w2r = params["w2f"].astype(f32), params["w2r"].astype(f32)
    b1f, b1r = params["b1f"].astype(f32), params["b1r"].astype(f32)
    b2f, b2r = params["b2f"].astype(f32), params["b2r"].astype(f32)
    wn, bn = params["wn"].astype(f32), params["bn"].astype(f32)

    w1a = jnp.concatenate([w1f[:d], w1r[d:]], axis=1)           # [D, 2H]
    w1b = jnp.concatenate([w1f[d:], w1r[:d]], axis=1)           # [D, 2H]
    pq = jnp.concatenate([node_states @ w1a, node_states @ w1b], axis=0)  # [2N, 2H]
    b1c = jnp.concatenate([b1f, b1r], axis=1)                   # [1, 2H]
    zhm = jnp.zeros((h, m), f32)
    w2c = jnp.concatenate(
        [jnp.concatenate([w2f, zhm], axis=1),
         jnp.concatenate([zhm, w2r], axis=1)], axis=0)          # [2H, 2M]
    b2c = jnp.concatenate([b2f, b2r], axis=1)                   # [1, 2M]
    wna, wnb = wn[:m], wn[m:]                                   # [M, D], [D, D]

    grid = (num_cores, tiles_per_core)

    def _const(arr):
        return pl.BlockSpec(arr.shape, lambda c, i: (0,) * arr.ndim)

    parts = pl.pallas_call(
        graph_prop_kernel,
        out_shape=jax.ShapeDtypeStruct((num_cores, n_nodes, d), f32),
        grid_spec=pltpu.PrefetchScalarGridSpec(
            num_scalar_prefetch=0,
            grid=grid,
            in_specs=[
                pl.BlockSpec((te, 2), lambda c, i: (c * tiles_per_core + i, 0)),
                pl.BlockSpec((2, te), lambda c, i: (0, c * tiles_per_core + i)),
                _const(node_states),
                _const(pq), _const(b1c),
                _const(w2c), _const(b2c),
                _const(wna), _const(wnb), _const(bn),
            ],
            out_specs=pl.BlockSpec((None, n_nodes, d), lambda c, i: (c, 0, 0)),
            scratch_shapes=[pltpu.VMEM((n_nodes, m), f32)],
        ),
        compiler_params=pltpu.CompilerParams(
            dimension_semantics=("parallel", "arbitrary")),
    )(gather_idx, scatter_idx, node_states, pq, b1c, w2c, b2c, wna, wnb, bn)

    return parts[0] if num_cores == 1 else jnp.sum(parts, axis=0)


def reference(node_states, from_idx, to_idx, params):
    """Pure-JAX reference of the same forward pass (for correctness check)."""
    n_nodes = node_states.shape[0]

    def msg_net(x, w1, b1, w2, b2):
        return jnp.maximum(x @ w1 + b1, 0.0) @ w2 + b2

    fs = node_states[from_idx]
    ts = node_states[to_idx]
    m_f = msg_net(jnp.concatenate([fs, ts], -1),
                  params["w1f"], params["b1f"], params["w2f"], params["b2f"])
    agg = jax.ops.segment_sum(m_f, to_idx, num_segments=n_nodes)
    m_r = msg_net(jnp.concatenate([ts, fs], -1),
                  params["w1r"], params["b1r"], params["w2r"], params["b2r"])
    agg = agg + jax.ops.segment_sum(m_r, from_idx, num_segments=n_nodes)
    node_in = jnp.concatenate([agg, node_states], -1)
    return node_states + (node_in @ params["wn"] + params["bn"])


if __name__ == "__main__":
    N, E = 32, 200         # n_nodes, n_edges (E deliberately not a tile multiple)
    D = 32                 # node_state_dim
    H, M = 64, 64          # edge_hidden_sizes = [H, M]
    edge_net_init_scale = 0.1

    key = jax.random.PRNGKey(0)
    ks = jax.random.split(key, 12)

    node_states = jax.random.normal(ks[0], (N, D), jnp.float32)
    from_idx = jax.random.randint(ks[1], (E,), 0, N, jnp.int32)
    to_idx = jax.random.randint(ks[2], (E,), 0, N, jnp.int32)

    params = {
        # forward message net: Linear(2D->H), ReLU, Linear(H->M)
        "w1f": jax.random.normal(ks[3], (2 * D, H), jnp.float32) * edge_net_init_scale,
        "b1f": jnp.zeros((1, H), jnp.float32),
        "w2f": jax.random.normal(ks[4], (H, M), jnp.float32) * edge_net_init_scale,
        "b2f": jnp.zeros((1, M), jnp.float32),
        # reverse message net (different params)
        "w1r": jax.random.normal(ks[5], (2 * D, H), jnp.float32) * edge_net_init_scale,
        "b1r": jnp.zeros((1, H), jnp.float32),
        "w2r": jax.random.normal(ks[6], (H, M), jnp.float32) * edge_net_init_scale,
        "b2r": jnp.zeros((1, M), jnp.float32),
        # node-update MLP (single Linear, residual): Linear(M + D -> D)
        "wn": jax.random.normal(ks[7], (M + D, D), jnp.float32) * 0.05,
        "bn": jnp.zeros((1, D), jnp.float32),
    }

    ref = reference(node_states, from_idx, to_idx, params)

    # Default path: single 256-edge tile (E=200 padded to 256), one grid step.
    out = graph_prop_layer(node_states, from_idx, to_idx, params)
    out = jax.block_until_ready(out)
    assert out.shape == (N, D) and out.dtype == jnp.float32
    assert jnp.allclose(out, ref, atol=1e-4, rtol=1e-4), "mismatch (1 core)"

    # Dual-core / multi-tile path (v7x-style split): 2 x 128-edge tiles,
    # exercises the grid accumulation, -1 padding, and the per-core partial
    # outputs summed in the wrapper.
    out2 = graph_prop_layer(node_states, from_idx, to_idx, params,
                            edge_tile=128, num_cores=2)
    out2 = jax.block_until_ready(out2)
    assert jnp.allclose(out2, ref, atol=1e-4, rtol=1e-4), "mismatch (2 cores)"

    print("KERNEL_OK")
</pallas_src>

<mosaic_0001>
module attributes {stable_mosaic.version = 11 : i64} {
  func.func @graph_prop_kernel(%arg0: i32, %arg1: i32, %arg2: memref<256x2xi32, #tpu.memory_space<vmem>>, %arg3: memref<2x256xi32, #tpu.memory_space<vmem>>, %arg4: memref<32x32xf32, #tpu.memory_space<vmem>>, %arg5: memref<64x128xf32, #tpu.memory_space<vmem>>, %arg6: memref<1x128xf32, #tpu.memory_space<vmem>>, %arg7: memref<128x128xf32, #tpu.memory_space<vmem>>, %arg8: memref<1x128xf32, #tpu.memory_space<vmem>>, %arg9: memref<64x32xf32, #tpu.memory_space<vmem>>, %arg10: memref<32x32xf32, #tpu.memory_space<vmem>>, %arg11: memref<1x32xf32, #tpu.memory_space<vmem>>, %arg12: memref<1x32x32xf32, #tpu.memory_space<vmem>>, %arg13: memref<32x64xf32, #tpu.memory_space<vmem>>) attributes {dimension_semantics = [#tpu.dimension_semantics<parallel>, #tpu.dimension_semantics<arbitrary>], iteration_bounds = array<i64: 1, 1>, scalar_prefetch = 0 : i64, scratch_operands = 1 : i64, tpu.core_type = #tpu.core_type<tc>, window_params = [{transform_indices = @transform_0, window_bounds = array<i64: 256, 2>}, {transform_indices = @transform_1, window_bounds = array<i64: 2, 256>}, {pipeline_mode = #tpu.pipeline_mode<synchronous>, transform_indices = @transform_2, window_bounds = array<i64: 32, 32>}, {pipeline_mode = #tpu.pipeline_mode<synchronous>, transform_indices = @transform_3, window_bounds = array<i64: 64, 128>}, {pipeline_mode = #tpu.pipeline_mode<synchronous>, transform_indices = @transform_4, window_bounds = array<i64: 1, 128>}, {pipeline_mode = #tpu.pipeline_mode<synchronous>, transform_indices = @transform_5, window_bounds = array<i64: 128, 128>}, {pipeline_mode = #tpu.pipeline_mode<synchronous>, transform_indices = @transform_6, window_bounds = array<i64: 1, 128>}, {pipeline_mode = #tpu.pipeline_mode<synchronous>, transform_indices = @transform_7, window_bounds = array<i64: 64, 32>}, {pipeline_mode = #tpu.pipeline_mode<synchronous>, transform_indices = @transform_8, window_bounds = array<i64: 32, 32>}, {pipeline_mode = #tpu.pipeline_mode<synchronous>, transform_indices = @transform_9, window_bounds = array<i64: 1, 32>}, {transform_indices = @transform_10, window_bounds = array<i64: 1, 32, 32>}]} {
    %c0_i32 = arith.constant 0 : i32
    %0 = arith.cmpi eq, %arg1, %c0_i32 : i32
    %1 = arith.extui %0 : i1 to i32
    %c0_i32_0 = arith.constant 0 : i32
    %2 = arith.cmpi ne, %1, %c0_i32_0 : i32
    scf.if %2 {
      %cst_25 = arith.constant 0.000000e+00 : f32
      %56 = vector.broadcast %cst_25 : f32 to vector<32x64xf32>
      %c0_26 = arith.constant 0 : index
      %c0_27 = arith.constant 0 : index
      %57 = vector.load %arg13[%c0_26, %c0_27] : memref<32x64xf32, #tpu.memory_space<vmem>>, vector<32x64xf32>
      tpu.vector_store %arg13[%c0_26, %c0_27], %56 {strides = array<i32>} : memref<32x64xf32, #tpu.memory_space<vmem>>, vector<32x64xf32>,
    } else {
    }
    %c0 = arith.constant 0 : index
    %c0_1 = arith.constant 0 : index
    %3 = vector.load %arg2[%c0, %c0_1] : memref<256x2xi32, #tpu.memory_space<vmem>>, vector<256x2xi32>
    %4 = tpu.iota {dimensions = array<i32: 1>} : vector<256x64xi32>
    %5 = vector.extract_strided_slice %3 {offsets = [0, 0], sizes = [256, 1], strides = [1, 1]} : vector<256x2xi32> to vector<256x1xi32>
    %6 = vector.broadcast %5 : vector<256x1xi32> to vector<256x64xi32>
    %7 = arith.cmpi eq, %4, %6 : vector<256x64xi32>
    %8 = arith.extui %7 : vector<256x64xi1> to vector<256x64xi32>
    %9 = arith.sitofp %8 : vector<256x64xi32> to vector<256x64xf32>
    %10 = vector.extract_strided_slice %3 {offsets = [0, 1], sizes = [256, 1], strides = [1, 1]} : vector<256x2xi32> to vector<256x1xi32>
    %11 = vector.broadcast %10 : vector<256x1xi32> to vector<256x64xi32>
    %12 = arith.cmpi eq, %4, %11 : vector<256x64xi32>
    %13 = arith.extui %12 : vector<256x64xi1> to vector<256x64xi32>
    %14 = arith.sitofp %13 : vector<256x64xi32> to vector<256x64xf32>
    %15 = arith.addf %9, %14 : vector<256x64xf32>
    %c0_2 = arith.constant 0 : index
    %c0_3 = arith.constant 0 : index
    %16 = vector.load %arg5[%c0_2, %c0_3] : memref<64x128xf32, #tpu.memory_space<vmem>>, vector<64x128xf32>
    %cst = arith.constant dense<0.000000e+00> : vector<256x128xf32>
    %17 = tpu.matmul %15, %16, %cst {dimension_numbers = #tpu.dot_dimension_numbers<[1], [0], [0], [1], [0, 0, 1, 1], [], []>} : vector<256x64xf32>, vector<64x128xf32>, vector<256x128xf32> -> vector<256x128xf32>
    %c0_4 = arith.constant 0 : index
    %c0_5 = arith.constant 0 : index
    %18 = vector.load %arg6[%c0_4, %c0_5] : memref<1x128xf32, #tpu.memory_space<vmem>>, vector<1x128xf32>
    %19 = vector.broadcast %18 : vector<1x128xf32> to vector<256x128xf32>
    %20 = arith.addf %17, %19 : vector<256x128xf32>
    %cst_6 = arith.constant 0.000000e+00 : f32
    %21 = vector.broadcast %cst_6 : f32 to vector<256x128xf32>
    %22 = arith.maximumf %20, %21 : vector<256x128xf32>
    %c0_7 = arith.constant 0 : index
    %c0_8 = arith.constant 0 : index
    %23 = vector.load %arg7[%c0_7, %c0_8] : memref<128x128xf32, #tpu.memory_space<vmem>>, vector<128x128xf32>
    %cst_9 = arith.constant dense<0.000000e+00> : vector<256x128xf32>
    %24 = tpu.matmul %22, %23, %cst_9 {dimension_numbers = #tpu.dot_dimension_numbers<[1], [0], [0], [1], [0, 0, 1, 1], [], []>} : vector<256x128xf32>, vector<128x128xf32>, vector<256x128xf32> -> vector<256x128xf32>
    %c0_10 = arith.constant 0 : index
    %c0_11 = arith.constant 0 : index
    %25 = vector.load %arg8[%c0_10, %c0_11] : memref<1x128xf32, #tpu.memory_space<vmem>>, vector<1x128xf32>
    %26 = vector.broadcast %25 : vector<1x128xf32> to vector<256x128xf32>
    %27 = arith.addf %24, %26 : vector<256x128xf32>
    %c0_12 = arith.constant 0 : index
    %c0_13 = arith.constant 0 : index
    %28 = vector.load %arg3[%c0_12, %c0_13] : memref<2x256xi32, #tpu.memory_space<vmem>>, vector<2x256xi32>
    %29 = tpu.iota {dimensions = array<i32: 0>} : vector<32x256xi32>
    %30 = vector.extract_strided_slice %28 {offsets = [0, 0], sizes = [1, 256], strides = [1, 1]} : vector<2x256xi32> to vector<1x256xi32>
    %31 = vector.broadcast %30 : vector<1x256xi32> to vector<32x256xi32>
    %32 = arith.cmpi eq, %29, %31 : vector<32x256xi32>
    %33 = arith.extui %32 : vector<32x256xi1> to vector<32x256xi32>
    %34 = arith.sitofp %33 : vector<32x256xi32> to vector<32x256xf32>
    %35 = vector.extract_strided_slice %28 {offsets = [1, 0], sizes = [1, 256], strides = [1, 1]} : vector<2x256xi32> to vector<1x256xi32>
    %36 = vector.broadcast %35 : vector<1x256xi32> to vector<32x256xi32>
    %37 = arith.cmpi eq, %29, %36 : vector<32x256xi32>
    %38 = arith.extui %37 : vector<32x256xi1> to vector<32x256xi32>
    %39 = arith.sitofp %38 : vector<32x256xi32> to vector<32x256xf32>
    %c0_14 = arith.constant 0 : index
    %c0_15 = arith.constant 0 : index
    %40 = vector.load %arg13[%c0_14, %c0_15] : memref<32x64xf32, #tpu.memory_space<vmem>>, vector<32x64xf32>
    %41 = vector.extract_strided_slice %27 {offsets = [0, 0], sizes = [256, 64], strides = [1, 1]} : vector<256x128xf32> to vector<256x64xf32>
    %cst_16 = arith.constant dense<0.000000e+00> : vector<32x64xf32>
    %42 = tpu.matmul %34, %41, %cst_16 {dimension_numbers = #tpu.dot_dimension_numbers<[1], [0], [0], [1], [0, 0, 1, 1], [], []>} : vector<32x256xf32>, vector<256x64xf32>, vector<32x64xf32> -> vector<32x64xf32>
    %43 = vector.extract_strided_slice %27 {offsets = [0, 64], sizes = [256, 64], strides = [1, 1]} : vector<256x128xf32> to vector<256x64xf32>
    %cst_17 = arith.constant dense<0.000000e+00> : vector<32x64xf32>
    %44 = tpu.matmul %39, %43, %cst_17 {dimension_numbers = #tpu.dot_dimension_numbers<[1], [0], [0], [1], [0, 0, 1, 1], [], []>} : vector<32x256xf32>, vector<256x64xf32>, vector<32x64xf32> -> vector<32x64xf32>
    %45 = arith.addf %42, %44 : vector<32x64xf32>
    %46 = arith.addf %40, %45 : vector<32x64xf32>
    %c0_18 = arith.constant 0 : index
    %c0_19 = arith.constant 0 : index
    %47 = vector.load %arg13[%c0_18, %c0_19] : memref<32x64xf32, #tpu.memory_space<vmem>>, vector<32x64xf32>
    tpu.vector_store %arg13[%c0_18, %c0_19], %46 {strides = array<i32>} : memref<32x64xf32, #tpu.memory_space<vmem>>, vector<32x64xf32>,
    %c0_i32_20 = arith.constant 0 : i32
    %48 = arith.cmpi eq, %arg1, %c0_i32_20 : i32
    %49 = arith.extui %48 : i1 to i32
    %c0_i32_21 = arith.constant 0 : i32
    %50 = arith.cmpi ne, %49, %c0_i32_21 : i32
    scf.if %50 {
      %c0_25 = arith.constant 0 : index
      %c0_26 = arith.constant 0 : index
      %56 = vector.load %arg13[%c0_25, %c0_26] : memref<32x64xf32, #tpu.memory_space<vmem>>, vector<32x64xf32>
      %c0_27 = arith.constant 0 : index
      %c0_28 = arith.constant 0 : index
      %57 = vector.load %arg9[%c0_27, %c0_28] : memref<64x32xf32, #tpu.memory_space<vmem>>, vector<64x32xf32>
      %cst_29 = arith.constant dense<0.000000e+00> : vector<32x32xf32>
      %58 = tpu.matmul %56, %57, %cst_29 {dimension_numbers = #tpu.dot_dimension_numbers<[1], [0], [0], [1], [0, 0, 1, 1], [], []>} : vector<32x64xf32>, vector<64x32xf32>, vector<32x32xf32> -> vector<32x32xf32>
      %c0_30 = arith.constant 0 : index
      %c0_31 = arith.constant 0 : index
      %c0_32 = arith.constant 0 : index
      %59 = vector.load %arg12[%c0_30, %c0_31, %c0_32] : memref<1x32x32xf32, #tpu.memory_space<vmem>>, vector<1x32x32xf32>
      %60 = vector.shape_cast %59 : vector<1x32x32xf32> to vector<32x32xf32>
      %61 = vector.shape_cast %58 : vector<32x32xf32> to vector<1x32x32xf32>
      tpu.vector_store %arg12[%c0_30, %c0_31, %c0_32], %61 {strides = array<i32>} : memref<1x32x32xf32, #tpu.memory_space<vmem>>, vector<1x32x32xf32>,
    } else {
    }
    %c0_i32_22 = arith.constant 0 : i32
    %51 = arith.cmpi eq, %arg1, %c0_i32_22 : i32
    %c0_i32_23 = arith.constant 0 : i32
    %52 = arith.cmpi eq, %arg0, %c0_i32_23 : i32
    %53 = arith.andi %51, %52 : i1
    %54 = arith.extui %53 : i1 to i32
    %c0_i32_24 = arith.constant 0 : i32
    %55 = arith.cmpi ne, %54, %c0_i32_24 : i32
    scf.if %55 {
      %c0_25 = arith.constant 0 : index
      %c0_26 = arith.constant 0 : index
      %56 = vector.load %arg4[%c0_25, %c0_26] : memref<32x32xf32, #tpu.memory_space<vmem>>, vector<32x32xf32>
      %c0_27 = arith.constant 0 : index
      %c0_28 = arith.constant 0 : index
      %c0_29 = arith.constant 0 : index
      %57 = vector.load %arg12[%c0_27, %c0_28, %c0_29] : memref<1x32x32xf32, #tpu.memory_space<vmem>>, vector<1x32x32xf32>
      %58 = vector.shape_cast %57 : vector<1x32x32xf32> to vector<32x32xf32>
      %c0_30 = arith.constant 0 : index
      %c0_31 = arith.constant 0 : index
      %59 = vector.load %arg10[%c0_30, %c0_31] : memref<32x32xf32, #tpu.memory_space<vmem>>, vector<32x32xf32>
      %cst_32 = arith.constant dense<0.000000e+00> : vector<32x32xf32>
      %60 = tpu.matmul %56, %59, %cst_32 {dimension_numbers = #tpu.dot_dimension_numbers<[1], [0], [0], [1], [0, 0, 1, 1], [], []>} : vector<32x32xf32>, vector<32x32xf32>, vector<32x32xf32> -> vector<32x32xf32>
      %61 = arith.addf %56, %60 : vector<32x32xf32>
      %c0_33 = arith.constant 0 : index
      %c0_34 = arith.constant 0 : index
      %62 = vector.load %arg11[%c0_33, %c0_34] : memref<1x32xf32, #tpu.memory_space<vmem>>, vector<1x32xf32>
      %63 = vector.broadcast %62 : vector<1x32xf32> to vector<32x32xf32>
      %64 = arith.addf %61, %63 : vector<32x32xf32>
      %65 = arith.addf %58, %64 : vector<32x32xf32>
      %c0_35 = arith.constant 0 : index
      %c0_36 = arith.constant 0 : index
      %c0_37 = arith.constant 0 : index
      %66 = vector.load %arg12[%c0_35, %c0_36, %c0_37] : memref<1x32x32xf32, #tpu.memory_space<vmem>>, vector<1x32x32xf32>
      %67 = vector.shape_cast %66 : vector<1x32x32xf32> to vector<32x32xf32>
      %68 = vector.shape_cast %65 : vector<32x32xf32> to vector<1x32x32xf32>
      tpu.vector_store %arg12[%c0_35, %c0_36, %c0_37], %68 {strides = array<i32>} : memref<1x32x32xf32, #tpu.memory_space<vmem>>, vector<1x32x32xf32>,
    } else {
    }
    return
  }
  func.func @transform_0(%arg0: i32, %arg1: i32) -> (i32, i32) {
    %c1_i32 = arith.constant 1 : i32
    %0 = arith.muli %arg0, %c1_i32 : i32
    %1 = arith.addi %0, %arg1 : i32
    %c0_i32 = arith.constant 0 : i32
    %c0_i32_0 = arith.constant 0 : i32
    return %1, %c0_i32 : i32, i32
  }
  func.func @transform_1(%arg0: i32, %arg1: i32) -> (i32, i32) {
    %c1_i32 = arith.constant 1 : i32
    %0 = arith.muli %arg0, %c1_i32 : i32
    %1 = arith.addi %0, %arg1 : i32
    %c0_i32 = arith.constant 0 : i32
    %c0_i32_0 = arith.constant 0 : i32
    return %c0_i32, %1 : i32, i32
  }
  func.func @transform_2(%arg0: i32, %arg1: i32) -> (i32, i32) {
    %c0_i32 = arith.constant 0 : i32
    %c0_i32_0 = arith.constant 0 : i32
    %c0_i32_1 = arith.constant 0 : i32
    return %c0_i32, %c0_i32_0 : i32, i32
  }
  func.func @transform_3(%arg0: i32, %arg1: i32) -> (i32, i32) {
    %c0_i32 = arith.constant 0 : i32
    %c0_i32_0 = arith.constant 0 : i32
    %c0_i32_1 = arith.constant 0 : i32
    return %c0_i32, %c0_i32_0 : i32, i32
  }
  func.func @transform_4(%arg0: i32, %arg1: i32) -> (i32, i32) {
    %c0_i32 = arith.constant 0 : i32
    %c0_i32_0 = arith.constant 0 : i32
    %c0_i32_1 = arith.constant 0 : i32
    return %c0_i32, %c0_i32_0 : i32, i32
  }
  func.func @transform_5(%arg0: i32, %arg1: i32) -> (i32, i32) {
    %c0_i32 = arith.constant 0 : i32
    %c0_i32_0 = arith.constant 0 : i32
    %c0_i32_1 = arith.constant 0 : i32
    return %c0_i32, %c0_i32_0 : i32, i32
  }
  func.func @transform_6(%arg0: i32, %arg1: i32) -> (i32, i32) {
    %c0_i32 = arith.constant 0 : i32
    %c0_i32_0 = arith.constant 0 : i32
    %c0_i32_1 = arith.constant 0 : i32
    return %c0_i32, %c0_i32_0 : i32, i32
  }
  func.func @transform_7(%arg0: i32, %arg1: i32) -> (i32, i32) {
    %c0_i32 = arith.constant 0 : i32
    %c0_i32_0 = arith.constant 0 : i32
    %c0_i32_1 = arith.constant 0 : i32
    return %c0_i32, %c0_i32_0 : i32, i32
  }
  func.func @transform_8(%arg0: i32, %arg1: i32) -> (i32, i32) {
    %c0_i32 = arith.constant 0 : i32
    %c0_i32_0 = arith.constant 0 : i32
    %c0_i32_1 = arith.constant 0 : i32
    return %c0_i32, %c0_i32_0 : i32, i32
  }
  func.func @transform_9(%arg0: i32, %arg1: i32) -> (i32, i32) {
    %c0_i32 = arith.constant 0 : i32
    %c0_i32_0 = arith.constant 0 : i32
    %c0_i32_1 = arith.constant 0 : i32
    return %c0_i32, %c0_i32_0 : i32, i32
  }
  func.func @transform_10(%arg0: i32, %arg1: i32) -> (i32, i32, i32) {
    %c0_i32 = arith.constant 0 : i32
    %c0_i32_0 = arith.constant 0 : i32
    %c0_i32_1 = arith.constant 0 : i32
    return %arg0, %c0_i32, %c0_i32_0 : i32, i32, i32
  }
}

</mosaic_0001>

<bundles_post_ra>
// kernel: tpu_custom_call.1
= control target key start
LH: loop header
LB: loop body
LE: loop exit
PB: predicated region body
PF: predicated region fallthrough
CT: control target
= control target key end

     0   :  { %v1732_v2 = vmov 0   ;;  %s2589_s0 = inlined_call_operand.vmem [shape: s32[256,2], index: 0, kind: input, shape index: {}]   ;;  %s2590_s1 = inlined_call_operand.vmem [shape: s32[2,256], index: 1, kind: input, shape index: {}]   ;;  %s2591_s2 = inlined_call_operand.vmem [shape: f32[32,32], index: 2, kind: input, shape index: {}]   ;;  %s2592_s3 = inlined_call_operand.vmem [shape: f32[64,128], index: 3, kind: input, shape index: {}]   ;;  %s2593_s4 = inlined_call_operand.vmem [shape: f32[1,128], index: 4, kind: input, shape index: {}]   ;;  %s2594_s5 = inlined_call_operand.vmem [shape: f32[128,128], index: 5, kind: input, shape index: {}]   ;;  %s2595_s6 = inlined_call_operand.vmem [shape: f32[1,128], index: 6, kind: input, shape index: {}]   ;;  %s2596_s7 = inlined_call_operand.vmem [shape: f32[64,32], index: 7, kind: input, shape index: {}]   ;;  %s2597_s8 = inlined_call_operand.vmem [shape: f32[32,32], index: 8, kind: input, shape index: {}]   ;;  %s2598_s9 = inlined_call_operand.vmem [shape: f32[1,32], index: 9, kind: input, shape index: {}]   ;;  %s2599_s10 = inlined_call_operand.hbm [shape: f32[1,32,32], index: 10, kind: output, shape index: {}]  }
   0x1   :  { %v90_v0 = vld [vmem:[%s2589_s0 + $0x8] sm:$0xff]  ;;  %v89_v1 = vld [vmem:[%s2589_s0] sm:$0xff]  ;;  %1584 = vset.pattern.permute.xlu1 %v1732_v2  ;;  %1582 = vset.pattern.permute.xlu0 %v1732_v2  ;;  %v91_v3 = vld [vmem:[%s2589_s0 + $0x10] sm:$0xff] }
   0x2   :  { %127 = vperm.xlu1 %1584, %v90_v0   ;;  %124 = vperm.xlu0 %1582, %v89_v1  }
   0x3   :  { %1586 = vset.pattern.permute.xlu2 %v1732_v2 }
   0x4   :  { %15 = vsyncpa [#allocation4], 0  ;;  %130 = vperm.xlu2 %1586, %v91_v3   ;;  %v1733_v4 = vmov 1   ;;  %v92_v5 = vld [vmem:[%s2589_s0 + $0x18] sm:$0xff]  ;;  %v93_v6 = vld [vmem:[%s2589_s0 + $0x20] sm:$0xff]  ;;  %vm84_vm0 = vcmask 523264   ;;  %v121_v32 = vlaneseq }
   0x5   :  { %v95_v7 = vld [vmem:[%s2589_s0 + $0x30] sm:$0xff]  ;;  %v94_v8 = vld [vmem:[%s2589_s0 + $0x28] sm:$0xff]  ;;  %v96_v10 = vld [vmem:[%s2589_s0 + $0x38] sm:$0xff]  ;;  %v1734_v26 = vmov 0.0   ;;  %s1390_s11 = sshll.u32 %s2599_s10, 4  ;;  %s1739_s12 = smov 8   ;;  %s1391_s11 = int_to_ptr.hbm [resolvable:$true] %s1390_s11 }
   0x6   :  { %v98_v9 = vld [vmem:[%s2589_s0 + $0x48] sm:$0xff]  ;;  %v100_v11 = vld [vmem:[%s2589_s0 + $0x58] sm:$0xff]  ;;  %v97_v12 = vld [vmem:[%s2589_s0 + $0x40] sm:$0xff]  ;;  %85 = vst.msk [vmem:[#allocation2] sm:$0xff] %vm84_vm0, %v1734_v26  ;;  %v1914_v37 = vand.u32 127, %v121_v32 }
   0x7   :  { %v99_v13 = vld [vmem:[%s2589_s0 + $0x50] sm:$0xff]  ;;  %v546_v14 = vld [vmem:[%s2592_s3 + $0x38] sm:$0xff]  ;;  %v101_v16 = vld [vmem:[%s2589_s0 + $0x60] sm:$0xff]  ;;  %86 = vst.msk [vmem:[#allocation2 + $0x8] sm:$0xff] %vm84_vm0, %v1734_v26 }
   0x8   :  { %656 = vmatpush.msra.mxu0 %v546_v14  ;;  %v103_v15 = vld [vmem:[%s2589_s0 + $0x70] sm:$0xff]  ;;  %1550 = vmatpush.msra.mxu3 %v546_v14  ;;  %v102_v18 = vld [vmem:[%s2589_s0 + $0x68] sm:$0xff]  ;;  %v543_v20 = vld [vmem:[%s2592_s3 + $0x20] sm:$0xff]  ;;  %87 = vst.msk [vmem:[#allocation2 + $0x10] sm:$0xff] %vm84_vm0, %v1734_v26 }
   0x9   :  { %v545_v17 = vld [vmem:[%s2592_s3 + $0x30] sm:$0xff]  ;;  %v544_v19 = vld [vmem:[%s2592_s3 + $0x28] sm:$0xff]  ;;  %v542_v21 = vld [vmem:[%s2592_s3 + $0x18] sm:$0xff]  ;;  %88 = vst.msk [vmem:[#allocation2 + $0x18] sm:$0xff] %vm84_vm0, %v1734_v26 }
   0xa   :  { %1585 = vset.pattern.permute.xlu1 %v1733_v4  ;;  %1583 = vset.pattern.permute.xlu0 %v1733_v4  ;;  %v541_v22 = vld [vmem:[%s2592_s3 + $0x10] sm:$0xff]  ;;  %v540_v23 = vld [vmem:[%s2592_s3 + $0x8] sm:$0xff]  ;;  %v539_v24 = vld [vmem:[%s2592_s3] sm:$0xff]  ;;  %s1735_s3 = smov 64  }
   0xb   :  { %319 = vperm.xlu1 %1585, %v90_v0   ;;  %316 = vperm.xlu0 %1583, %v89_v1   ;;  %v105_v25 = vld [vmem:[%s2589_s0 + $0x80] sm:$0xff]  ;;  %v104_v27 = vld [vmem:[%s2589_s0 + $0x78] sm:$0xff]  ;;  %v106_v30 = vld [vmem:[%s2589_s0 + $0x88] sm:$0xff] }
   0xc   :  { %1587 = vset.pattern.permute.xlu2 %v1733_v4  ;;  %657 = vmatpush.msra.mxu0 %v545_v17  ;;  %v108_v31 = vld [vmem:[%s2589_s0 + $0x98] sm:$0xff]  ;;  %v107_v36 = vld [vmem:[%s2589_s0 + $0x90] sm:$0xff]  ;;  %v110_v44 = vld [vmem:[%s2589_s0 + $0xa8] sm:$0xff] }
   0xd   :  { %322 = vperm.xlu2 %1587, %v91_v3   ;;  %1551 = vmatpush.msra.mxu3 %v545_v17  ;;  %v109_v45 = vld [vmem:[%s2589_s0 + $0xa0] sm:$0xff]  ;;  %v111_v55 = vld [vmem:[%s2589_s0 + $0xb0] sm:$0xff]  ;;  %v112_v62 = vld [vmem:[%s2589_s0 + $0xb8] sm:$0xff] }
   0xe   :  { %658 = vmatpush.msra.mxu0 %v544_v19  ;;  %v113_v63 = vld [vmem:[%s2589_s0 + $0xc0] sm:$0xff]  ;;  %v115_v14 = vld [vmem:[%s2589_s0 + $0xd0] sm:$0xff] }
   0xf   :  { %1552 = vmatpush.msra.mxu3 %v544_v19 }
  0x10   :  { %659 = vmatpush.msra.mxu0 %v543_v20 }
  0x11   :  { %1553 = vmatpush.msra.mxu3 %v543_v20 }
  0x12   :  { %660 = vmatpush.msra.mxu0 %v542_v21 }
  0x13   :  { %1588 = vset.pattern.permute.xlu1 %v1732_v2  ;;  %1589 = vset.pattern.permute.xlu0 %v1732_v2 }
  0x14   :  { %133 = vperm.xlu1 %1588, %v92_v5   ;;  %136 = vperm.xlu0 %1589, %v93_v6  }
  0x15   :  { %325 = vperm.xlu2 %1587, %v92_v5   ;;  %1554 = vmatpush.msra.mxu3 %v542_v21 }
  0x16   :  { %661 = vmatpush.msra.mxu0 %v541_v22 }
  0x17   :  { %1555 = vmatpush.msra.mxu3 %v541_v22  ;;  %v116_v22 = vld [vmem:[%s2589_s0 + $0xd8] sm:$0xff] }
  0x18   :  { %662 = vmatpush.msra.mxu0 %v540_v23 }
  0x19   :  { %1556 = vmatpush.msra.mxu3 %v540_v23 }
  0x1a   :  { %663 = vmatpush.msra.mxu0 %v539_v24 }
  0x1b   :  { %1557 = vmatpush.msra.mxu3 %v539_v24 }
  0x1c   :  { %1590 = vset.pattern.permute.xlu1 %v1733_v4  ;;  %1592 = vset.pattern.permute.xlu0 %v1733_v4 }
  0x1d   :  { %328 = vperm.xlu1 %1590, %v93_v6   ;;  %334 = vperm.xlu0 %1592, %v95_v7  }
  0x1e   :  { %1591 = vset.pattern.permute.xlu2 %v1732_v2 }
  0x1f   :  { %139 = vperm.xlu2 %1591, %v94_v8  }
  0x25   :  { %331 = vperm.xlu1 %1590, %v94_v8   ;;  %1595 = vset.pattern.permute.xlu0 %v1732_v2 }
  0x26   :  { %151 = vperm.xlu0 %1595, %v98_v9  }
  0x27   :  { %142 = vperm.xlu2 %1591, %v95_v7  }
  0x2d   :  { %1593 = vset.pattern.permute.xlu1 %v1732_v2 }
  0x2e   :  { %145 = vperm.xlu1 %1593, %v96_v10   ;;  %1598 = vset.pattern.permute.xlu0 %v1733_v4 }
  0x2f   :  { %1594 = vset.pattern.permute.xlu2 %v1733_v4  ;;  %349 = vperm.xlu0 %1598, %v100_v11  }
  0x30   :  { %337 = vperm.xlu2 %1594, %v96_v10   ;;  %v114_v10 = vld [vmem:[%s2589_s0 + $0xc8] sm:$0xff] }
  0x36   :  { %148 = vperm.xlu1 %1593, %v97_v12  }
  0x37   :  { %1601 = vset.pattern.permute.xlu0 %v1732_v2 }
  0x38   :  { %340 = vperm.xlu2 %1594, %v97_v12   ;;  %166 = vperm.xlu0 %1601, %v103_v15  }
  0x3e   :  { %1596 = vset.pattern.permute.xlu1 %v1733_v4 }
  0x3f   :  { %343 = vperm.xlu1 %1596, %v98_v9  }
  0x40   :  { %1597 = vset.pattern.permute.xlu2 %v1732_v2  ;;  %1604 = vset.pattern.permute.xlu0 %v1733_v4 }
  0x41   :  { %154 = vperm.xlu2 %1597, %v99_v13   ;;  %364 = vperm.xlu0 %1604, %v105_v25  }
  0x47   :  { %346 = vperm.xlu1 %1596, %v99_v13  }
  0x49   :  { %157 = vperm.xlu2 %1597, %v100_v11   ;;  %1607 = vset.pattern.permute.xlu0 %v1732_v2 }
  0x4a   :  { %181 = vperm.xlu0 %1607, %v108_v31  }
  0x4f   :  { %1599 = vset.pattern.permute.xlu1 %v1732_v2 }
  0x50   :  { %160 = vperm.xlu1 %1599, %v101_v16  }
  0x51   :  { %1600 = vset.pattern.permute.xlu2 %v1733_v4 }
  0x52   :  { %352 = vperm.xlu2 %1600, %v101_v16   ;;  %1610 = vset.pattern.permute.xlu0 %v1733_v4 }
  0x53   :  { %379 = vperm.xlu0 %1610, %v110_v44  }
  0x58   :  { %163 = vperm.xlu1 %1599, %v102_v18  }
  0x5a   :  { %355 = vperm.xlu2 %1600, %v102_v18  }
  0x5b   :  { %1613 = vset.pattern.permute.xlu0 %v1732_v2 }
  0x5c   :  { %196 = vperm.xlu0 %1613, %v113_v63  }
  0x5e   :  { %v131_v28 = vpop.permute.xlu2 %130 }
  0x5f   :  { %vm221_vm5 = vcmp.eq.s32.totalorder %v1914_v37, %v131_v28 }
  0x60   :  { %1602 = vset.pattern.permute.xlu1 %v1733_v4  ;;  %v1416_v51 = vsel %vm221_vm5, 1.0, %v1734_v26 }
  0x61   :  { %358 = vperm.xlu1 %1602, %v103_v15  }
  0x62   :  { %1603 = vset.pattern.permute.xlu2 %v1732_v2 }
  0x63   :  { %169 = vperm.xlu2 %1603, %v104_v27  }
  0x64   :  { %1616 = vset.pattern.permute.xlu0 %v1733_v4 }
  0x65   :  { %394 = vperm.xlu0 %1616, %v115_v14  }
  0x67   :  { %v323_v29 = vpop.permute.xlu2 %322 }
  0x68   :  { %vm413_vm6 = vcmp.eq.s32.totalorder %v1914_v37, %v323_v29 }
  0x69   :  { %361 = vperm.xlu1 %1602, %v104_v27   ;;  %v1448_v52 = vsel %vm413_vm6, 1.0, %v1734_v26  ;;  %v117_v27 = vld [vmem:[%s2589_s0 + $0xe0] sm:$0xff] }
  0x6a   :  { %v509_v54 = vadd.f32 %v1448_v52, %v1416_v51  ;;  %v801_v52 = vld [vmem:[%s2594_s5 + $0x40] sm:$0xff] }
  0x6b   :  { %172 = vperm.xlu2 %1603, %v105_v25  }
  0x6d   :  { %1619 = vset.pattern.permute.xlu0 %v1732_v2 }
  0x6f   :  { %v326_v35 = vpop.permute.xlu2 %325 }
  0x70   :  { %vm414_vm7 = vcmp.eq.s32.totalorder %v1914_v37, %v326_v35  ;;  %v808_v35 = vld [vmem:[%s2594_s5 + $0x78] sm:$0xff] }
  0x71   :  { %1605 = vset.pattern.permute.xlu1 %v1732_v2  ;;  %v1449_v57 = vsel %vm414_vm7, 1.0, %v1734_v26  ;;  %813 = vmatpush.msra.mxu1 %v808_v35 }
  0x72   :  { %175 = vperm.xlu1 %1605, %v106_v30   ;;  %1558 = vmatpush.msra.mxu2 %v808_v35 }
  0x73   :  { %1606 = vset.pattern.permute.xlu2 %v1733_v4 }
  0x74   :  { %v125_v33 = vpop.permute.xlu0 %124  ;;  %v128_v34 = vpop.permute.xlu1 %127  ;;  %367 = vperm.xlu2 %1606, %v106_v30  }
  0x75   :  { %vm219_vm1 = vcmp.eq.s32.totalorder %v1914_v37, %v125_v33  ;;  %vm220_vm3 = vcmp.eq.s32.totalorder %v1914_v37, %v128_v34 }
  0x76   :  { %v1414_v41 = vsel %vm219_vm1, 1.0, %v1734_v26  ;;  %v1415_v46 = vsel %vm220_vm3, 1.0, %v1734_v26 }
  0x79   :  { %v1919_v40 = vpop.permute.xlu2 %139 }
  0x7a   :  { %178 = vperm.xlu1 %1605, %v107_v36   ;;  %vm224_vm11 = vcmp.eq.s32.totalorder %v1914_v37, %v1919_v40 }
  0x7b   :  { %v1419_v8 = vsel %vm224_vm11, 1.0, %v1734_v26 }
  0x7c   :  { %370 = vperm.xlu2 %1606, %v107_v36   ;;  %v118_v36 = vld [vmem:[%s2589_s0 + $0xe8] sm:$0xff] }
  0x7d   :  { %v317_v38 = vpop.permute.xlu0 %316  ;;  %v320_v39 = vpop.permute.xlu1 %319  ;;  %211 = vperm.xlu0 %1619, %v118_v36  }
  0x7e   :  { %vm411_vm2 = vcmp.eq.s32.totalorder %v1914_v37, %v317_v38  ;;  %vm412_vm4 = vcmp.eq.s32.totalorder %v1914_v37, %v320_v39  ;;  %v807_v38 = vld [vmem:[%s2594_s5 + $0x70] sm:$0xff] }
  0x7f   :  { %v1446_v42 = vsel %vm411_vm2, 1.0, %v1734_v26  ;;  %v1447_v47 = vsel %vm412_vm4, 1.0, %v1734_v26  ;;  %814 = vmatpush.msra.mxu1 %v807_v38  ;;  %1559 = vmatpush.msra.mxu2 %v807_v38 }
  0x80   :  { %v507_v43 = vadd.f32 %v1446_v42, %v1414_v41  ;;  %v508_v49 = vadd.f32 %v1447_v47, %v1415_v46  ;;  %v806_v41 = vld [vmem:[%s2594_s5 + $0x68] sm:$0xff]  ;;  %v119_v46 = vld [vmem:[%s2589_s0 + $0xf0] sm:$0xff] }
  0x81   :  { %v143_v50 = vpop.permute.xlu2 %142  ;;  %815 = vmatpush.msra.mxu1 %v806_v41  ;;  %1560 = vmatpush.msra.mxu2 %v806_v41  ;;  %v803_v47 = vld [vmem:[%s2594_s5 + $0x50] sm:$0xff] }
  0x82   :  { %1478 = vmatmul.msk.f32.vlgmr.msra.gmra.mxu0 %vm84_vm0, %v507_v43  ;;  %1608 = vset.pattern.permute.xlu1 %v1733_v4  ;;  %vm225_vm13 = vcmp.eq.s32.totalorder %v1914_v37, %v143_v50  ;;  %v802_v50 = vld [vmem:[%s2594_s5 + $0x48] sm:$0xff] }
  0x83   :  { %373 = vperm.xlu1 %1608, %v108_v31   ;;  %v1420_v15 = vsel %vm225_vm13, 1.0, %v1734_v26 }
  0x84   :  { %1609 = vset.pattern.permute.xlu2 %v1732_v2 }
  0x85   :  { %184 = vperm.xlu2 %1609, %v109_v45   ;;  %1622 = vset.pattern.permute.xlu0 %v1733_v4 }
  0x86   :  { %v134_v48 = vpop.permute.xlu1 %133  ;;  %v137_v59 = vpop.permute.xlu0 %136 }
  0x87   :  { %vm222_vm8 = vcmp.eq.s32.totalorder %v1914_v37, %v134_v48  ;;  %vm223_vm10 = vcmp.eq.s32.totalorder %v1914_v37, %v137_v59 }
  0x88   :  { %v1417_v58 = vsel %vm222_vm8, 1.0, %v1734_v26  ;;  %v1418_v1 = vsel %vm223_vm10, 1.0, %v1734_v26 }
  0x89   :  { %v510_v60 = vadd.f32 %v1449_v57, %v1417_v58  ;;  %v799_v57 = vld [vmem:[%s2594_s5 + $0x30] sm:$0xff] }
  0x8a   :  { %1479 = vmatmul.msk.f32.gmra.mxu0 %vm84_vm0, %v508_v49  ;;  %v338_v56 = vpop.permute.xlu2 %337 }
  0x8b   :  { %376 = vperm.xlu1 %1608, %v109_v45   ;;  %vm418_vm15 = vcmp.eq.s32.totalorder %v1914_v37, %v338_v56 }
  0x8c   :  { %v1453_v20 = vsel %vm418_vm15, 1.0, %v1734_v26 }
  0x8d   :  { %187 = vperm.xlu2 %1609, %v110_v44   ;;  %v805_v44 = vld [vmem:[%s2594_s5 + $0x60] sm:$0xff] }
  0x8e   :  { %816 = vmatpush.msra.mxu1 %v805_v44  ;;  %1561 = vmatpush.msra.mxu2 %v805_v44 }
  0x8f   :  { %v329_v53 = vpop.permute.xlu1 %328  ;;  %v335_v11 = vpop.permute.xlu0 %334 }
  0x90   :  { %vm415_vm9 = vcmp.eq.s32.totalorder %v1914_v37, %v329_v53  ;;  %vm417_vm14 = vcmp.eq.s32.totalorder %v1914_v37, %v335_v11 }
  0x91   :  { %v1450_v0 = vsel %vm415_vm9, 1.0, %v1734_v26  ;;  %v1452_v16 = vsel %vm417_vm14, 1.0, %v1734_v26 }
  0x92   :  { %1480 = vmatmul.msk.f32.gmra.mxu0 %vm84_vm0, %v509_v54  ;;  %v341_v3 = vpop.permute.xlu2 %340  ;;  %v511_v5 = vadd.f32 %v1450_v0, %v1418_v1  ;;  %v513_v18 = vadd.f32 %v1452_v16, %v1420_v15  ;;  %v800_v54 = vld [vmem:[%s2594_s5 + $0x38] sm:$0xff] }
  0x93   :  { %1611 = vset.pattern.permute.xlu1 %v1732_v2  ;;  %vm419_vm2 = vcmp.eq.s32.totalorder %v1914_v37, %v341_v3  ;;  %v796_v0 = vld [vmem:[%s2594_s5 + $0x18] sm:$0xff] }
  0x94   :  { %190 = vperm.xlu1 %1611, %v111_v55   ;;  %v1454_v28 = vsel %vm419_vm2, 1.0, %v1734_v26 }
  0x95   :  { %1612 = vset.pattern.permute.xlu2 %v1733_v4 }
  0x96   :  { %382 = vperm.xlu2 %1612, %v111_v55   ;;  %v120_v55 = vld [vmem:[%s2589_s0 + $0xf8] sm:$0xff]  ;;  %s1738_s0 = smov 128  }
  0x97   :  { %v332_v61 = vpop.permute.xlu1 %331  ;;  %409 = vperm.xlu0 %1622, %v120_v55  }
  0x98   :  { %vm416_vm12 = vcmp.eq.s32.totalorder %v1914_v37, %v332_v61  ;;  %v152_v30 = vpop.permute.xlu0 %151 }
  0x99   :  { %v1451_v9 = vsel %vm416_vm12, 1.0, %v1734_v26  ;;  %vm228_vm5 = vcmp.eq.s32.totalorder %v1914_v37, %v152_v30 }
  0x9a   :  { %1481 = vmatmul.msk.f32.gmra.mxu0 %vm84_vm0, %v510_v60  ;;  %v512_v12 = vadd.f32 %v1451_v9, %v1419_v8  ;;  %v1423_v40 = vsel %vm228_vm5, 1.0, %v1734_v26  ;;  %v798_v60 = vld [vmem:[%s2594_s5 + $0x28] sm:$0xff]  ;;  %v793_v9 = vld [vmem:[%s2594_s5] sm:$0xff] }
  0x9b   :  { %v1969_v7 = vpop.permute.xlu2 %154  ;;  %v794_v8 = vld [vmem:[%s2594_s5 + $0x8] sm:$0xff] }
  0x9c   :  { %193 = vperm.xlu1 %1611, %v112_v62   ;;  %vm229_vm6 = vcmp.eq.s32.totalorder %v1914_v37, %v1969_v7  ;;  %v795_v7 = vld [vmem:[%s2594_s5 + $0x10] sm:$0xff] }
  0x9d   :  { %v1424_v48 = vsel %vm229_vm6, 1.0, %v1734_v26 }
  0x9e   :  { %385 = vperm.xlu2 %1612, %v112_v62   ;;  %v797_v62 = vld [vmem:[%s2594_s5 + $0x20] sm:$0xff] }
  0xa0   :  { %v146_v6 = vpop.permute.xlu1 %145 }
  0xa1   :  { %vm226_vm1 = vcmp.eq.s32.totalorder %v1914_v37, %v146_v6  ;;  %v350_v51 = vpop.permute.xlu0 %349 }
  0xa2   :  { %1482 = vmatmul.msk.f32.gmra.mxu0 %vm84_vm0, %v511_v5  ;;  %v1421_v21 = vsel %vm226_vm1, 1.0, %v1734_v26  ;;  %vm422_vm9 = vcmp.eq.s32.totalorder %v1914_v37, %v350_v51 }
  0xa3   :  { %v1985_v17 = vpop.permute.xlu2 %157  ;;  %v514_v23 = vadd.f32 %v1453_v20, %v1421_v21  ;;  %v1457_v59 = vsel %vm422_vm9, 1.0, %v1734_v26 }
  0xa4   :  { %1614 = vset.pattern.permute.xlu1 %v1733_v4  ;;  %vm230_vm8 = vcmp.eq.s32.totalorder %v1914_v37, %v1985_v17 }
  0xa5   :  { %388 = vperm.xlu1 %1614, %v113_v63   ;;  %v1425_v58 = vsel %vm230_vm8, 1.0, %v1734_v26 }
  0xa6   :  { %1615 = vset.pattern.permute.xlu2 %v1732_v2  ;;  %v518_v61 = vadd.f32 %v1457_v59, %v1425_v58 }
  0xa7   :  { %199 = vperm.xlu2 %1615, %v114_v10  }
  0xa8   :  { %v149_v13 = vpop.permute.xlu1 %148 }
  0xa9   :  { %vm227_vm3 = vcmp.eq.s32.totalorder %v1914_v37, %v149_v13 }
  0xaa   :  { %1483 = vmatmul.msk.f32.gmra.mxu0 %vm84_vm0, %v512_v12  ;;  %v1422_v29 = vsel %vm227_vm3, 1.0, %v1734_v26 }
  0xab   :  { %v515_v31 = vadd.f32 %v1454_v28, %v1422_v29  ;;  %v2133_v28 = vld [vmem:[%s2593_s4] ss:$0 sm:$0xff] }
  0xac   :  { %v1998_v24 = vpop.permute.xlu2 %352 }
  0xad   :  { %391 = vperm.xlu1 %1614, %v114_v10   ;;  %vm423_vm10 = vcmp.eq.s32.totalorder %v1914_v37, %v1998_v24 }
  0xae   :  { %v1458_v1 = vsel %vm423_vm10, 1.0, %v1734_v26 }
  0xaf   :  { %202 = vperm.xlu2 %1615, %v115_v14   ;;  %v167_v14 = vpop.permute.xlu0 %166 }
  0xb0   :  { %vm233_vm15 = vcmp.eq.s32.totalorder %v1914_v37, %v167_v14 }
  0xb1   :  { %v344_v19 = vpop.permute.xlu1 %343  ;;  %v1428_v17 = vsel %vm233_vm15, 1.0, %v1734_v26 }
  0xb2   :  { %1484 = vmatmul.msk.f32.gmra.mxu0 %vm84_vm0, %v513_v18  ;;  %vm420_vm4 = vcmp.eq.s32.totalorder %v1914_v37, %v344_v19 }
  0xb3   :  { %v1455_v39 = vsel %vm420_vm4, 1.0, %v1734_v26 }
  0xb4   :  { %v2013_v34 = vpop.permute.xlu2 %355  ;;  %v516_v42 = vadd.f32 %v1455_v39, %v1423_v40 }
  0xb5   :  { %1617 = vset.pattern.permute.xlu1 %v1732_v2  ;;  %vm424_vm12 = vcmp.eq.s32.totalorder %v1914_v37, %v2013_v34 }
  0xb6   :  { %205 = vperm.xlu1 %1617, %v116_v22   ;;  %v1459_v12 = vsel %vm424_vm12, 1.0, %v1734_v26 }
  0xb7   :  { %1618 = vset.pattern.permute.xlu2 %v1733_v4 }
  0xb8   :  { %397 = vperm.xlu2 %1618, %v116_v22  }
  0xb9   :  { %v347_v25 = vpop.permute.xlu1 %346 }
  0xba   :  { %1485 = vmatmul.msk.f32.gmra.mxu0 %vm84_vm0, %v514_v23  ;;  %vm421_vm7 = vcmp.eq.s32.totalorder %v1914_v37, %v347_v25  ;;  %v365_v25 = vpop.permute.xlu0 %364 }
  0xbb   :  { %v1456_v49 = vsel %vm421_vm7, 1.0, %v1734_v26  ;;  %vm427_vm4 = vcmp.eq.s32.totalorder %v1914_v37, %v365_v25 }
  0xbc   :  { %v1462_v30 = vsel %vm427_vm4, 1.0, %v1734_v26 }
  0xbd   :  { %v2040_v45 = vpop.permute.xlu2 %169 }
  0xbe   :  { %208 = vperm.xlu1 %1617, %v117_v27   ;;  %vm234_vm1 = vcmp.eq.s32.totalorder %v1914_v37, %v2040_v45 }
  0xbf   :  { %v1429_v22 = vsel %vm234_vm1, 1.0, %v1734_v26 }
  0xc0   :  { %400 = vperm.xlu2 %1618, %v117_v27  }
  0xc2   :  { %1486 = vmatmul.msk.f32.gmra.mxu0 %vm84_vm0, %v515_v31  ;;  %v2011_v33 = vpop.permute.xlu1 %160  ;;  %v182_v35 = vpop.permute.xlu0 %181 }
  0xc3   :  { %vm231_vm11 = vcmp.eq.s32.totalorder %v1914_v37, %v2011_v33  ;;  %vm238_vm10 = vcmp.eq.s32.totalorder %v1914_v37, %v182_v35 }
  0xc4   :  { %v1426_v3 = vsel %vm231_vm11, 1.0, %v1734_v26  ;;  %v1433_v59 = vsel %vm238_vm10, 1.0, %v1734_v26 }
  0xc5   :  { %v2064_v53 = vpop.permute.xlu2 %172  ;;  %v519_v6 = vadd.f32 %v1458_v1, %v1426_v3 }
  0xc6   :  { %1620 = vset.pattern.permute.xlu1 %v1733_v4  ;;  %v517_v4 = vadd.f32 %v1456_v49, %v1424_v48  ;;  %vm235_vm3 = vcmp.eq.s32.totalorder %v1914_v37, %v2064_v53 }
  0xc7   :  { %403 = vperm.xlu1 %1620, %v118_v36   ;;  %v1430_v29 = vsel %vm235_vm3, 1.0, %v1734_v26 }
  0xc8   :  { %1621 = vset.pattern.permute.xlu2 %v1732_v2  ;;  %v804_v2 = vld [vmem:[%s2594_s5 + $0x58] sm:$0xff]  ;;  %v523_v36 = vadd.f32 %v1462_v30, %v1430_v29 }
  0xc9   :  { %214 = vperm.xlu2 %1621, %v119_v46   ;;  %817 = vmatpush.msra.mxu1 %v804_v2 }
  0xca   :  { %1487 = vmatmul.msk.f32.gmra.mxu0 %vm84_vm0, %v516_v42  ;;  %v2035_v43 = vpop.permute.xlu1 %163  ;;  %1562 = vmatpush.msra.mxu2 %v804_v2 }
  0xcb   :  { %818 = vmatpush.msra.mxu1 %v803_v47  ;;  %vm232_vm13 = vcmp.eq.s32.totalorder %v1914_v37, %v2035_v43 }
  0xcc   :  { %1563 = vmatpush.msra.mxu2 %v803_v47  ;;  %v1427_v13 = vsel %vm232_vm13, 1.0, %v1734_v26 }
  0xcd   :  { %819 = vmatpush.msra.mxu1 %v802_v50  ;;  %v520_v15 = vadd.f32 %v1459_v12, %v1427_v13 }
  0xce   :  { %1564 = vmatpush.msra.mxu2 %v802_v50  ;;  %v2088_v63 = vpop.permute.xlu2 %367 }
  0xcf   :  { %406 = vperm.xlu1 %1620, %v119_v46   ;;  %820 = vmatpush.msra.mxu1 %v801_v52  ;;  %vm428_vm5 = vcmp.eq.s32.totalorder %v1914_v37, %v2088_v63  ;;  %v2151_v46 = vpop.permute.xlu0 %379 }
  0xd0   :  { %1565 = vmatpush.msra.mxu2 %v801_v52  ;;  %v1463_v40 = vsel %vm428_vm5, 1.0, %v1734_v26  ;;  %vm432_vm5 = vcmp.eq.s32.totalorder %v1914_v37, %v2151_v46 }
  0xd1   :  { %217 = vperm.xlu2 %1621, %v120_v55   ;;  %821 = vmatpush.msra.mxu1 %v800_v54 }
  0xd2   :  { %1488 = vmatmul.msk.f32.gmra.mxu0 %vm84_vm0, %v517_v4  ;;  %1566 = vmatpush.msra.mxu2 %v800_v54 }
  0xd3   :  { %v359_v56 = vpop.permute.xlu1 %358  ;;  %822 = vmatpush.msra.mxu1 %v799_v57 }
  0xd4   :  { %1567 = vmatpush.msra.mxu2 %v799_v57  ;;  %vm425_vm14 = vcmp.eq.s32.totalorder %v1914_v37, %v359_v56 }
  0xd5   :  { %823 = vmatpush.msra.mxu1 %v798_v60  ;;  %v1460_v16 = vsel %vm425_vm14, 1.0, %v1734_v26 }
  0xd6   :  { %1568 = vmatpush.msra.mxu2 %v798_v60  ;;  %v371_v11 = vpop.permute.xlu2 %370  ;;  %v521_v20 = vadd.f32 %v1460_v16, %v1428_v17 }
  0xd7   :  { %824 = vmatpush.msra.mxu1 %v797_v62  ;;  %vm429_vm7 = vcmp.eq.s32.totalorder %v1914_v37, %v371_v11  ;;  %v197_v56 = vpop.permute.xlu0 %196 }
  0xd8   :  { %1569 = vmatpush.msra.mxu2 %v797_v62  ;;  %v1464_v48 = vsel %vm429_vm7, 1.0, %v1734_v26  ;;  %vm243_vm13 = vcmp.eq.s32.totalorder %v1914_v37, %v197_v56 }
  0xd9   :  { %825 = vmatpush.msra.mxu1 %v796_v0 }
  0xda   :  { %1489 = vmatmul.msk.f32.gmra.mxu0 %vm84_vm0, %v518_v61  ;;  %1570 = vmatpush.msra.mxu2 %v796_v0  ;;  %v1438_v0 = vsel %vm243_vm13, 1.0, %v1734_v26 }
  0xdb   :  { %v362_v5 = vpop.permute.xlu1 %361  ;;  %826 = vmatpush.msra.mxu1 %v795_v7 }
  0xdc   :  { %1571 = vmatpush.msra.mxu2 %v795_v7  ;;  %vm426_vm2 = vcmp.eq.s32.totalorder %v1914_v37, %v362_v5 }
  0xdd   :  { %827 = vmatpush.msra.mxu1 %v794_v8  ;;  %v1461_v23 = vsel %vm426_vm2, 1.0, %v1734_v26 }
  0xde   :  { %1572 = vmatpush.msra.mxu2 %v794_v8  ;;  %v522_v27 = vadd.f32 %v1461_v23, %v1429_v22 }
  0xdf   :  { %828 = vmatpush.msra.mxu1 %v793_v9  ;;  %v2116_v19 = vpop.permute.xlu2 %184 }
  0xe0   :  { %1573 = vmatpush.msra.mxu2 %v793_v9  ;;  %vm239_vm15 = vcmp.eq.s32.totalorder %v1914_v37, %v2116_v19 }
  0xe1   :  { %v1434_v8 = vsel %vm239_vm15, 1.0, %v1734_v26 }
  0xe2   :  { %1490 = vmatmul.msk.f32.gmra.mxu0 %vm84_vm0, %v519_v6 }
  0xe4   :  { %v176_v10 = vpop.permute.xlu1 %175 }
  0xe5   :  { %vm236_vm6 = vcmp.eq.s32.totalorder %v1914_v37, %v176_v10  ;;  %v395_v10 = vpop.permute.xlu0 %394 }
  0xe6   :  { %v1431_v41 = vsel %vm236_vm6, 1.0, %v1734_v26  ;;  %vm437_vm7 = vcmp.eq.s32.totalorder %v1914_v37, %v395_v10 }
  0xe7   :  { %v2122_v21 = vpop.permute.xlu2 %187  ;;  %v524_v42 = vadd.f32 %v1463_v40, %v1431_v41  ;;  %v1472_v22 = vsel %vm437_vm7, 1.0, %v1734_v26 }
  0xe8   :  { %vm240_vm4 = vcmp.eq.s32.totalorder %v1914_v37, %v2122_v21 }
  0xe9   :  { %v1435_v19 = vsel %vm240_vm4, 1.0, %v1734_v26 }
  0xea   :  { %1491 = vmatmul.msk.f32.gmra.mxu0 %vm84_vm0, %v520_v15 }
  0xec   :  { %v179_v18 = vpop.permute.xlu1 %178 }
  0xed   :  { %vm237_vm8 = vcmp.eq.s32.totalorder %v1914_v37, %v179_v18 }
  0xee   :  { %v1432_v49 = vsel %vm237_vm8, 1.0, %v1734_v26 }
  0xef   :  { %v525_v52 = vadd.f32 %v1464_v48, %v1432_v49 }
  0xf0   :  { %v2139_v33 = vpop.permute.xlu2 %382 }
  0xf1   :  { %vm433_vm8 = vcmp.eq.s32.totalorder %v1914_v37, %v2139_v33 }
  0xf2   :  { %1492 = vmatmul.msk.f32.gmra.mxu0 %vm84_vm0, %v521_v20  ;;  %v1467_v20 = vsel %vm432_vm5, 1.0, %v1734_v26 }
  0xf3   :  { %v528_v25 = vadd.f32 %v1467_v20, %v1435_v19 }
  0xf5   :  { %v374_v24 = vpop.permute.xlu1 %373 }
  0xf6   :  { %vm430_vm12 = vcmp.eq.s32.totalorder %v1914_v37, %v374_v24 }
  0xf7   :  { %v1465_v58 = vsel %vm430_vm12, 1.0, %v1734_v26 }
  0xf8   :  { %v386_v2 = vpop.permute.xlu2 %385  ;;  %v526_v61 = vadd.f32 %v1465_v58, %v1433_v59 }
  0xf9   :  { %vm434_vm9 = vcmp.eq.s32.totalorder %v1914_v37, %v386_v2 }
  0xfa   :  { %1493 = vmatmul.msk.f32.gmra.mxu0 %vm84_vm0, %v522_v27  ;;  %v1469_v50 = vsel %vm434_vm9, 1.0, %v1734_v26 }
  0xfd   :  { %v2137_v31 = vpop.permute.xlu1 %376 }
  0xfe   :  { %vm431_vm1 = vcmp.eq.s32.totalorder %v1914_v37, %v2137_v31 }
  0xff   :  { %v665_v34 = vpop.f32.mrf.mxu0  ;;  %v1466_v9 = vsel %vm431_vm1, 1.0, %v1734_v26 }
 0x100   :  { %v666_v38 = vadd.f32 %v2133_v28, %v665_v34  ;;  %v527_v14 = vadd.f32 %v1466_v9, %v1434_v8  ;;  %v1468_v34 = vsel %vm433_vm8, 1.0, %v1734_v26 }
 0x101   :  { %v200_v60 = vpop.permute.xlu2 %199 }
 0x102   :  { %v761_v39 = vmax.f32 %v666_v38, 0.0  ;;  %1494 = vmatmul.msk.f32.gmra.mxu0 %vm84_vm0, %v523_v36  ;;  %vm244_vm2 = vcmp.eq.s32.totalorder %v1914_v37, %v200_v60 }
 0x103   :  { %v1439_v12 = vsel %vm244_vm2, 1.0, %v1734_v26 }
 0x104   :  { %829 = vmatmul.f32.vlgmr.msra.gmra.mxu1 %v761_v39 }
 0x106   :  { %v2148_v43 = vpop.permute.xlu1 %190 }
 0x107   :  { %v668_v44 = vpop.f32.mrf.mxu0  ;;  %vm241_vm9 = vcmp.eq.s32.totalorder %v1914_v37, %v2148_v43 }
 0x108   :  { %v669_v45 = vadd.f32 %v2133_v28, %v668_v44  ;;  %v1436_v35 = vsel %vm241_vm9, 1.0, %v1734_v26 }
 0x109   :  { %v203_v7 = vpop.permute.xlu2 %202  ;;  %v529_v40 = vadd.f32 %v1468_v34, %v1436_v35 }
 0x10a   :  { %v762_v47 = vmax.f32 %v669_v45, 0.0  ;;  %1495 = vmatmul.msk.f32.gmra.mxu0 %vm84_vm0, %v524_v42  ;;  %vm245_vm6 = vcmp.eq.s32.totalorder %v1914_v37, %v203_v7 }
 0x10b   :  { %v1440_v21 = vsel %vm245_vm6, 1.0, %v1734_v26 }
 0x10c   :  { %832 = vmatmul.f32.gmra.mxu1 %v762_v47  ;;  %v533_v29 = vadd.f32 %v1472_v22, %v1440_v21  ;;  %v212_v47 = vpop.permute.xlu0 %211 }
 0x10d   :  { %vm248_vm15 = vcmp.eq.s32.totalorder %v1914_v37, %v212_v47 }
 0x10e   :  { %v194_v51 = vpop.permute.xlu1 %193 }
 0x10f   :  { %v671_v4 = vpop.f32.mrf.mxu0  ;;  %vm242_vm11 = vcmp.eq.s32.totalorder %v1914_v37, %v194_v51 }
 0x110   :  { %v672_v53 = vadd.f32 %v2133_v28, %v671_v4  ;;  %v1437_v54 = vsel %vm242_vm11, 1.0, %v1734_v26 }
 0x111   :  { %v530_v55 = vadd.f32 %v1469_v50, %v1437_v54 }
 0x112   :  { %v763_v57 = vmax.f32 %v672_v53, 0.0  ;;  %1496 = vmatmul.msk.f32.gmra.mxu0 %vm84_vm0, %v525_v52  ;;  %v398_v23 = vpop.permute.xlu2 %397  ;;  %v1443_v53 = vsel %vm248_vm15, 1.0, %v1734_v26 }
 0x113   :  { %1501 = vmatmul.msk.f32.vlgmr.msra.gmra.mxu3 %vm84_vm0, %v530_v55  ;;  %vm438_vm10 = vcmp.eq.s32.totalorder %v1914_v37, %v398_v23 }
 0x114   :  { %835 = vmatmul.f32.gmra.mxu1 %v763_v57  ;;  %v1473_v36 = vsel %vm438_vm10, 1.0, %v1734_v26 }
 0x117   :  { %v674_v62 = vpop.f32.mrf.mxu0  ;;  %v389_v63 = vpop.permute.xlu1 %388 }
 0x118   :  { %v675_v1 = vadd.f32 %v2133_v28, %v674_v62  ;;  %vm435_vm14 = vcmp.eq.s32.totalorder %v1914_v37, %v389_v63  ;;  %v410_v63 = vpop.permute.xlu0 %409 }
 0x119   :  { %v1470_v3 = vsel %vm435_vm14, 1.0, %v1734_v26  ;;  %vm442_vm4 = vcmp.eq.s32.totalorder %v1914_v37, %v410_v63 }
 0x11a   :  { %v764_v5 = vmax.f32 %v675_v1, 0.0  ;;  %1497 = vmatmul.msk.f32.gmra.mxu0 %vm84_vm0, %v526_v61  ;;  %v531_v6 = vadd.f32 %v1470_v3, %v1438_v0  ;;  %v401_v39 = vpop.permute.xlu2 %400 }
 0x11b   :  { %vm439_vm12 = vcmp.eq.s32.totalorder %v1914_v37, %v401_v39 }
 0x11c   :  { %838 = vmatmul.f32.gmra.mxu1 %v764_v5  ;;  %1502 = vmatmul.msk.f32.gmra.mxu3 %vm84_vm0, %v531_v6  ;;  %v1474_v45 = vsel %vm439_vm12, 1.0, %v1734_v26  ;;  %v1477_v6 = vsel %vm442_vm4, 1.0, %v1734_v26 }
 0x11f   :  { %v677_v11 = vpop.f32.mrf.mxu0  ;;  %v392_v13 = vpop.permute.xlu1 %391 }
 0x120   :  { %v678_v15 = vadd.f32 %v2133_v28, %v677_v11  ;;  %vm436_vm3 = vcmp.eq.s32.totalorder %v1914_v37, %v392_v13 }
 0x121   :  { %v1471_v16 = vsel %vm436_vm3, 1.0, %v1734_v26 }
 0x122   :  { %v765_v17 = vmax.f32 %v678_v15, 0.0  ;;  %1498 = vmatmul.msk.f32.gmra.mxu0 %vm84_vm0, %v527_v14  ;;  %v532_v18 = vadd.f32 %v1471_v16, %v1439_v12 }
 0x123   :  { %v215_v4 = vpop.permute.xlu2 %214 }
 0x124   :  { %841 = vmatmul.f32.gmra.mxu1 %v765_v17  ;;  %1503 = vmatmul.msk.f32.gmra.mxu3 %vm84_vm0, %v532_v18  ;;  %vm249_vm1 = vcmp.eq.s32.totalorder %v1914_v37, %v215_v4 }
 0x125   :  { %v1444_v59 = vsel %vm249_vm1, 1.0, %v1734_v26 }
 0x127   :  { %v680_v24 = vpop.f32.mrf.mxu0 }
 0x128   :  { %v681_v27 = vadd.f32 %v2133_v28, %v680_v24  ;;  %v206_v30 = vpop.permute.xlu1 %205 }
 0x129   :  { %vm246_vm11 = vcmp.eq.s32.totalorder %v1914_v37, %v206_v30 }
 0x12a   :  { %v766_v31 = vmax.f32 %v681_v27, 0.0  ;;  %1499 = vmatmul.msk.f32.gmra.mxu0 %vm84_vm0, %v528_v25  ;;  %v1441_v33 = vsel %vm246_vm11, 1.0, %v1734_v26 }
 0x12b   :  { %v534_v42 = vadd.f32 %v1473_v36, %v1441_v33  ;;  %v218_v61 = vpop.permute.xlu2 %217 }
 0x12c   :  { %844 = vmatmul.f32.gmra.mxu1 %v766_v31  ;;  %1504 = vmatmul.msk.f32.gmra.mxu3 %vm84_vm0, %v533_v29  ;;  %vm250_vm3 = vcmp.eq.s32.totalorder %v1914_v37, %v218_v61 }
 0x12d   :  { %v1445_v5 = vsel %vm250_vm3, 1.0, %v1734_v26 }
 0x12e   :  { %v538_v9 = vadd.f32 %v1477_v6, %v1445_v5 }
 0x12f   :  { %v683_v38 = vpop.f32.mrf.mxu0 }
 0x130   :  { %v684_v41 = vadd.f32 %v2133_v28, %v683_v38  ;;  %v209_v43 = vpop.permute.xlu1 %208 }
 0x131   :  { %vm247_vm13 = vcmp.eq.s32.totalorder %v1914_v37, %v209_v43 }
 0x132   :  { %v767_v44 = vmax.f32 %v684_v41, 0.0  ;;  %1500 = vmatmul.msk.f32.gmra.mxu0 %vm84_vm0, %v529_v40  ;;  %v1442_v2 = vsel %vm247_vm13, 1.0, %v1734_v26 }
 0x133   :  { %v535_v49 = vadd.f32 %v1474_v45, %v1442_v2 }
 0x134   :  { %847 = vmatmul.f32.gmra.mxu1 %v767_v44  ;;  %1505 = vmatmul.msk.f32.gmra.mxu3 %vm84_vm0, %v534_v42 }
 0x137   :  { %v686_v46 = vpop.f32.mrf.mxu0 }
 0x138   :  { %v687_v48 = vadd.f32 %v2133_v28, %v686_v46 }
 0x139   :  { %v404_v50 = vpop.permute.xlu1 %403 }
 0x13a   :  { %v768_v51 = vmax.f32 %v687_v48, 0.0  ;;  %vm440_vm14 = vcmp.eq.s32.totalorder %v1914_v37, %v404_v50 }
 0x13b   :  { %v1475_v52 = vsel %vm440_vm14, 1.0, %v1734_v26 }
 0x13c   :  { %850 = vmatmul.f32.gmra.mxu1 %v768_v51  ;;  %1506 = vmatmul.msk.f32.gmra.mxu3 %vm84_vm0, %v535_v49  ;;  %v536_v56 = vadd.f32 %v1475_v52, %v1443_v53 }
 0x13f   :  { %v689_v54 = vpop.f32.mrf.mxu0 }
 0x140   :  { %v690_v55 = vadd.f32 %v2133_v28, %v689_v54 }
 0x141   :  { %v407_v57 = vpop.permute.xlu1 %406 }
 0x142   :  { %v769_v58 = vmax.f32 %v690_v55, 0.0  ;;  %vm441_vm2 = vcmp.eq.s32.totalorder %v1914_v37, %v407_v57 }
 0x143   :  { %v1476_v60 = vsel %vm441_vm2, 1.0, %v1734_v26 }
 0x144   :  { %853 = vmatmul.f32.gmra.mxu1 %v769_v58  ;;  %1507 = vmatmul.msk.f32.gmra.mxu3 %vm84_vm0, %v536_v56  ;;  %v537_v1 = vadd.f32 %v1476_v60, %v1444_v59 }
 0x147   :  { %v692_v62 = vpop.f32.mrf.mxu0 }
 0x148   :  { %v693_v0 = vadd.f32 %v2133_v28, %v692_v62 }
 0x14a   :  { %v770_v3 = vmax.f32 %v693_v0, 0.0 }
 0x14c   :  { %856 = vmatmul.f32.gmra.mxu1 %v770_v3  ;;  %1508 = vmatmul.msk.f32.gmra.mxu3 %vm84_vm0, %v537_v1 }
 0x14f   :  { %v695_v7 = vpop.f32.mrf.mxu0 }
 0x150   :  { %v696_v8 = vadd.f32 %v2133_v28, %v695_v7 }
 0x152   :  { %v771_v10 = vmax.f32 %v696_v8, 0.0 }
 0x154   :  { %859 = vmatmul.f32.gmra.mxu1 %v771_v10  ;;  %1509 = vmatmul.msk.f32.gmra.mxu3 %vm84_vm0, %v538_v9 }
 0x157   :  { %v698_v11 = vpop.f32.mrf.mxu0 }
 0x158   :  { %v699_v12 = vadd.f32 %v2133_v28, %v698_v11 }
 0x15a   :  { %v772_v13 = vmax.f32 %v699_v12, 0.0 }
 0x15c   :  { %862 = vmatmul.f32.gmra.mxu1 %v772_v13 }
 0x15f   :  { %v701_v37 = vpop.f32.mrf.mxu0 }
 0x160   :  { %v702_v14 = vadd.f32 %v2133_v28, %v701_v37 }
 0x162   :  { %v773_v15 = vmax.f32 %v702_v14, 0.0 }
 0x164   :  { %865 = vmatmul.f32.gmra.mxu1 %v773_v15 }
 0x167   :  { %v704_v16 = vpop.f32.mrf.mxu0 }
 0x168   :  { %v705_v26 = vadd.f32 %v2133_v28, %v704_v16 }
 0x16a   :  { %v774_v17 = vmax.f32 %v705_v26, 0.0 }
 0x16c   :  { %868 = vmatmul.f32.gmra.mxu1 %v774_v17 }
 0x16f   :  { %v707_v18 = vpop.f32.mrf.mxu0 }
 0x170   :  { %v708_v19 = vadd.f32 %v2133_v28, %v707_v18 }
 0x172   :  { %v775_v20 = vmax.f32 %v708_v19, 0.0 }
 0x174   :  { %871 = vmatmul.f32.gmra.mxu1 %v775_v20 }
 0x177   :  { %v710_v21 = vpop.f32.mrf.mxu0 }
 0x178   :  { %v711_v22 = vadd.f32 %v2133_v28, %v710_v21 }
 0x17a   :  { %v776_v23 = vmax.f32 %v711_v22, 0.0 }
 0x17c   :  { %874 = vmatmul.f32.gmra.mxu1 %v776_v23 }
 0x17f   :  { %v713_v24 = vpop.f32.mrf.mxu0 }
 0x180   :  { %v714_v25 = vadd.f32 %v2133_v28, %v713_v24  ;;  %v2283_v24 = vld [vmem:[%s2595_s6] ss:$0 sm:$0xff] }
 0x181   :  { %v2245_v27 = vpop.f32.mrf.mxu1 }
 0x182   :  { %v777_v29 = vmax.f32 %v714_v25, 0.0 }
 0x184   :  { %877 = vmatmul.f32.gmra.mxu1 %v777_v29 }
 0x187   :  { %v716_v30 = vpop.f32.mrf.mxu0 }
 0x188   :  { %v717_v31 = vadd.f32 %v2133_v28, %v716_v30 }
 0x189   :  { %v2248_v34 = vpop.f32.mrf.mxu1 }
 0x18a   :  { %v778_v35 = vmax.f32 %v717_v31, 0.0 }
 0x18c   :  { %880 = vmatmul.f32.gmra.mxu1 %v778_v35 }
 0x18f   :  { %v719_v36 = vpop.f32.mrf.mxu0 }
 0x190   :  { %v720_v33 = vadd.f32 %v2133_v28, %v719_v36 }
 0x191   :  { %v2251_v38 = vpop.f32.mrf.mxu1 }
 0x192   :  { %v779_v39 = vmax.f32 %v720_v33, 0.0 }
 0x194   :  { %883 = vmatmul.f32.gmra.mxu1 %v779_v39 }
 0x196   :  { %v734_v47 = vpop.f32.mrf.mxu3 }
 0x197   :  { %v722_v40 = vpop.f32.mrf.mxu0  ;;  %v735_v56 = vadd.f32 %v2133_v28, %v734_v47 }
 0x198   :  { %v723_v41 = vadd.f32 %v2133_v28, %v722_v40 }
 0x199   :  { %v2254_v42 = vpop.f32.mrf.mxu1  ;;  %v784_v59 = vmax.f32 %v735_v56, 0.0 }
 0x19a   :  { %v780_v43 = vmax.f32 %v723_v41, 0.0 }
 0x19c   :  { %886 = vmatmul.f32.gmra.mxu1 %v780_v43 }
 0x19f   :  { %v725_v44 = vpop.f32.mrf.mxu0  ;;  %v737_v4 = vpop.f32.mrf.mxu3 }
 0x1a0   :  { %v726_v45 = vadd.f32 %v2133_v28, %v725_v44  ;;  %v738_v60 = vadd.f32 %v2133_v28, %v737_v4 }
 0x1a1   :  { %v2257_v2 = vpop.f32.mrf.mxu1 }
 0x1a2   :  { %v781_v46 = vmax.f32 %v726_v45, 0.0  ;;  %v785_v61 = vmax.f32 %v738_v60, 0.0 }
 0x1a4   :  { %889 = vmatmul.f32.gmra.mxu1 %v781_v46 }
 0x1a7   :  { %v728_v48 = vpop.f32.mrf.mxu0  ;;  %v740_v57 = vpop.f32.mrf.mxu3 }
 0x1a8   :  { %v729_v49 = vadd.f32 %v2133_v28, %v728_v48  ;;  %v741_v0 = vadd.f32 %v2133_v28, %v740_v57 }
 0x1a9   :  { %v2260_v50 = vpop.f32.mrf.mxu1 }
 0x1aa   :  { %v782_v51 = vmax.f32 %v729_v49, 0.0  ;;  %v786_v3 = vmax.f32 %v741_v0, 0.0 }
 0x1ac   :  { %892 = vmatmul.f32.gmra.mxu1 %v782_v51 }
 0x1af   :  { %v731_v52 = vpop.f32.mrf.mxu0  ;;  %v743_v63 = vpop.f32.mrf.mxu3 }
 0x1b0   :  { %v732_v53 = vadd.f32 %v2133_v28, %v731_v52  ;;  %v744_v6 = vadd.f32 %v2133_v28, %v743_v63 }
 0x1b1   :  { %v2263_v54 = vpop.f32.mrf.mxu1 }
 0x1b2   :  { %v783_v55 = vmax.f32 %v732_v53, 0.0  ;;  %v787_v8 = vmax.f32 %v744_v6, 0.0  ;;  %v2342_v6 = vadd.f32 %v2283_v24, %v2257_v2 }
 0x1b4   :  { %895 = vmatmul.f32.vlgmr.msra.gmra.mxu2 %v783_v55 }
 0x1b7   :  { %v746_v5 = vpop.f32.mrf.mxu3 }
 0x1b8   :  { %v747_v9 = vadd.f32 %v2133_v28, %v746_v5 }
 0x1b9   :  { %v2266_v58 = vpop.f32.mrf.mxu1 }
 0x1ba   :  { %v788_v11 = vmax.f32 %v747_v9, 0.0  ;;  %v2323_v57 = vadd.f32 %v2283_v24, %v2266_v58 }
 0x1bc   :  { %898 = vmatmul.f32.gmra.mxu2 %v784_v59 }
 0x1bf   :  { %v749_v10 = vpop.f32.mrf.mxu3 }
 0x1c0   :  { %v750_v13 = vadd.f32 %v2133_v28, %v749_v10 }
 0x1c1   :  { %v2269_v62 = vpop.f32.mrf.mxu1 }
 0x1c2   :  { %v789_v15 = vmax.f32 %v750_v13, 0.0 }
 0x1c4   :  { %901 = vmatmul.f32.gmra.mxu2 %v785_v61 }
 0x1c7   :  { %v752_v37 = vpop.f32.mrf.mxu3 }
 0x1c8   :  { %v753_v16 = vadd.f32 %v2133_v28, %v752_v37  ;;  %v2364_v37 = vadd.f32 %v2283_v24, %v2263_v54 }
 0x1c9   :  { %v857_v1 = vpop.f32.mrf.mxu1 }
 0x1ca   :  { %v790_v26 = vmax.f32 %v753_v16, 0.0  ;;  %v2301_v45 = vadd.f32 %v2283_v24, %v857_v1  ;;  %v2375_v16 = vadd.f32 %v2283_v24, %v2248_v34 }
 0x1cc   :  { %904 = vmatmul.f32.gmra.mxu2 %v786_v3 }
 0x1cf   :  { %v755_v17 = vpop.f32.mrf.mxu3 }
 0x1d0   :  { %v756_v19 = vadd.f32 %v2133_v28, %v755_v17 }
 0x1d1   :  { %v860_v7 = vpop.f32.mrf.mxu1 }
 0x1d2   :  { %v791_v21 = vmax.f32 %v756_v19, 0.0  ;;  %v2310_v51 = vadd.f32 %v2283_v24, %v860_v7 }
 0x1d4   :  { %907 = vmatmul.f32.gmra.mxu2 %v787_v8 }
 0x1d7   :  { %v758_v22 = vpop.f32.mrf.mxu3 }
 0x1d8   :  { %v759_v23 = vadd.f32 %v2133_v28, %v758_v22 }
 0x1d9   :  { %v863_v12 = vpop.f32.mrf.mxu1 }
 0x1da   :  { %v792_v29 = vmax.f32 %v759_v23, 0.0  ;;  %v2326_v59 = vadd.f32 %v2283_v24, %v863_v12 }
 0x1dc   :  { %910 = vmatmul.f32.gmra.mxu2 %v788_v11 }
 0x1e1   :  { %v866_v14 = vpop.f32.mrf.mxu1 }
 0x1e2   :  { %v2345_v7 = vadd.f32 %v2283_v24, %v866_v14 }
 0x1e4   :  { %913 = vmatmul.f32.gmra.mxu2 %v789_v15 }
 0x1e9   :  { %v2276_v18 = vpop.f32.mrf.mxu1 }
 0x1ea   :  { %v2368_v14 = vadd.f32 %v2283_v24, %v2276_v18 }
 0x1ec   :  { %916 = vmatmul.f32.gmra.mxu2 %v790_v26 }
 0x1f1   :  { %v872_v20 = vpop.f32.mrf.mxu1 }
 0x1f2   :  { %v2286_v30 = vadd.f32 %v2283_v24, %v872_v20  ;;  %v2394_v20 = vadd.f32 %v2283_v24, %v2254_v42 }
 0x1f4   :  { %919 = vmatmul.f32.gmra.mxu2 %v791_v21  ;;  %v2398_v21 = vadd.f32 %v2283_v24, %v2269_v62  ;;  %v2415_v62 = vadd.f32 %v2283_v24, %v2245_v27  ;;  %v2432_v27 = vadd.f32 %v2283_v24, %v2251_v38 }
 0x1f9   :  { %v875_v25 = vpop.f32.mrf.mxu1 }
 0x1fa   :  { %v2289_v31 = vadd.f32 %v2283_v24, %v875_v25 }
 0x1fc   :  { %v1623_v35 = vpack.i.bf16 %v2286_v30, %v2289_v31  ;;  %922 = vmatmul.f32.gmra.mxu2 %v792_v29  ;;  %v2419_v29 = vadd.f32 %v2283_v24, %v2260_v50 }
 0x1fe   :  { %1624 = vrot.lane.b32.xlu1 %v1623_v35, %s1735_s3 }
 0x201   :  { %v2296_v40 = vpop.f32.mrf.mxu1 }
 0x209   :  { %v2298_v43 = vpop.f32.mrf.mxu1 }
 0x211   :  { %v884_v48 = vpop.f32.mrf.mxu1 }
 0x212   :  { %v2407_v25 = vadd.f32 %v2283_v24, %v884_v48 }
 0x214   :  { %v1693_v35 = vpack.i.bf16 %v2415_v62, %v2407_v25 }
 0x219   :  { %v887_v55 = vpop.f32.mrf.mxu1 }
 0x21a   :  { %v2360_v12 = vadd.f32 %v2283_v24, %v887_v55 }
 0x21c   :  { %v1688_v54 = vpack.i.bf16 %v2375_v16, %v2360_v12 }
 0x221   :  { %v890_v9 = vpop.f32.mrf.mxu1 }
 0x229   :  { %v893_v19 = vpop.f32.mrf.mxu1 }
 0x22a   :  { %v2387_v18 = vadd.f32 %v2283_v24, %v893_v19 }
 0x22c   :  { %v1678_v22 = vpack.i.bf16 %v2394_v20, %v2387_v18 }
 0x237   :  { %v896_v28 = vpop.f32.mrf.mxu2 }
 0x238   :  { %v2338_v58 = vadd.f32 %v2283_v24, %v896_v28 }
 0x23a   :  { %v1673_v10 = vpack.i.bf16 %v2342_v6, %v2338_v58 }
 0x23f   :  { %v2294_v36 = vpop.f32.mrf.mxu2 }
 0x240   :  { %v2411_v42 = vadd.f32 %v2283_v24, %v2294_v36  ;;  %v2428_v36 = vadd.f32 %v2283_v24, %v890_v9 }
 0x242   :  { %v1668_v28 = vpack.i.bf16 %v2419_v29, %v2411_v42  ;;  %v1683_v50 = vpack.i.bf16 %v2432_v27, %v2428_v36 }
 0x247   :  { %v902_v33 = vpop.f32.mrf.mxu2 }
 0x248   :  { %v2357_v2 = vadd.f32 %v2283_v24, %v902_v33  ;;  %v2439_v33 = vadd.f32 %v2283_v24, %v2298_v43 }
 0x24a   :  { %v1663_v26 = vpack.i.bf16 %v2364_v37, %v2357_v2 }
 0x24f   :  { %v905_v39 = vpop.f32.mrf.mxu2 }
 0x250   :  { %v2319_v53 = vadd.f32 %v2283_v24, %v905_v39  ;;  %v2443_v39 = vadd.f32 %v2283_v24, %v2296_v40 }
 0x252   :  { %v1658_v0 = vpack.i.bf16 %v2323_v57, %v2319_v53 }
 0x257   :  { %v908_v41 = vpop.f32.mrf.mxu2 }
 0x258   :  { %v2390_v34 = vadd.f32 %v2283_v24, %v908_v41  ;;  %v1698_v41 = vpack.i.bf16 %v2443_v39, %v2439_v33 }
 0x25a   :  { %v1653_v23 = vpack.i.bf16 %v2398_v21, %v2390_v34 }
 0x25f   :  { %v911_v44 = vpop.f32.mrf.mxu2 }
 0x260   :  { %v2304_v46 = vadd.f32 %v2283_v24, %v911_v44 }
 0x262   :  { %v1628_v47 = vpack.i.bf16 %v2301_v45, %v2304_v46 }
 0x264   :  { %1629 = vrot.lane.b32.xlu1 %v1628_v47, %s1735_s3 }
 0x267   :  { %v914_v49 = vpop.f32.mrf.mxu2 }
 0x268   :  { %v2313_v4 = vadd.f32 %v2283_v24, %v914_v49 }
 0x26a   :  { %v1633_v52 = vpack.i.bf16 %v2310_v51, %v2313_v4 }
 0x26c   :  { %1634 = vrot.lane.b32.xlu0 %v1633_v52, %s1735_s3 }
 0x26f   :  { %v917_v56 = vpop.f32.mrf.mxu2 }
 0x270   :  { %v2329_v60 = vadd.f32 %v2283_v24, %v917_v56  ;;  %v1625_v61 = vpop.permute.xlu1 %1624 }
 0x271   :  { %v1626_v63 = vunpack.i.l.bf16 %v1625_v61  ;;  %v1627_v3 = vunpack.i.h.bf16 %v1625_v61 }
 0x272   :  { %v1638_v1 = vpack.i.bf16 %v2326_v59, %v2329_v60 }
 0x273   :  { %1120 = vmatpush.msrb.mxu2 %v1626_v63 }
 0x274   :  { %1639 = vrot.lane.b32.xlu2 %v1638_v1, %s1735_s3  ;;  %1659 = vrot.lane.b32.xlu0 %v1658_v0, %s1735_s3 }
 0x275   :  { %1121 = vmatpush.msrb.mxu2 %v1627_v3 }
 0x277   :  { %v920_v5 = vpop.f32.mrf.mxu2 }
 0x278   :  { %v2348_v8 = vadd.f32 %v2283_v24, %v920_v5 }
 0x27a   :  { %v1643_v11 = vpack.i.bf16 %v2345_v7, %v2348_v8 }
 0x27c   :  { %1644 = vrot.lane.b32.xlu1 %v1643_v11, %s1735_s3  ;;  %1674 = vrot.lane.b32.xlu0 %v1673_v10, %s1735_s3 }
 0x27f   :  { %v923_v13 = vpop.f32.mrf.mxu2 }
 0x280   :  { %v2371_v15 = vadd.f32 %v2283_v24, %v923_v13 }
 0x282   :  { %v1648_v17 = vpack.i.bf16 %v2368_v14, %v2371_v15 }
 0x284   :  { %1649 = vrot.lane.b32.xlu2 %v1648_v17, %s1735_s3  ;;  %1664 = vrot.lane.b32.xlu1 %v1663_v26, %s1735_s3 }
 0x285   :  { %1689 = vrot.lane.b32.xlu0 %v1688_v54, %s1735_s3 }
 0x28c   :  { %1654 = vrot.lane.b32.xlu2 %v1653_v23, %s1735_s3  ;;  %1679 = vrot.lane.b32.xlu1 %v1678_v22, %s1735_s3 }
 0x294   :  { %1669 = vrot.lane.b32.xlu2 %v1668_v28, %s1735_s3  ;;  %1694 = vrot.lane.b32.xlu1 %v1693_v35, %s1735_s3 }
 0x29c   :  { %1684 = vrot.lane.b32.xlu2 %v1683_v50, %s1735_s3  ;;  %v2451_v50 = vld [vmem:[%s2590_s1] sm:$0xf] }
 0x2a4   :  { %1699 = vrot.lane.b32.xlu2 %v1698_v41, %s1735_s3 }
 0x2ce   :  { %v1640_v38 = vpop.permute.xlu2 %1639 }
 0x2cf   :  { %v1642_v24 = vunpack.i.h.bf16 %v1640_v38  ;;  %v1641_v40 = vunpack.i.l.bf16 %v1640_v38 }
 0x2d6   :  { %v1630_v52 = vpop.permute.xlu1 %1629 }
 0x2d7   :  { %v1632_v5 = vunpack.i.h.bf16 %v1630_v52  ;;  %v1631_v9 = vunpack.i.l.bf16 %v1630_v52 }
 0x2de   :  { %v1650_v44 = vpop.permute.xlu2 %1649  ;;  %v1635_v49 = vpop.permute.xlu0 %1634 }
 0x2df   :  { %v1652_v47 = vunpack.i.h.bf16 %v1650_v44  ;;  %v1651_v48 = vunpack.i.l.bf16 %v1650_v44  ;;  %v1637_v1 = vunpack.i.h.bf16 %v1635_v49  ;;  %v1636_v3 = vunpack.i.l.bf16 %v1635_v49 }
 0x2e1   :  { %1122 = vmatpush.msrb.mxu2 %v1652_v47  ;;  %1149 = vmatpush.msrb.mxu3 %v1651_v48  ;;  %v960_v47 = vperm.slane %v2451_v50, 1 }
 0x2e6   :  { %v1655_v55 = vpop.permute.xlu2 %1654  ;;  %v1660_v43 = vpop.permute.xlu0 %1659 }
 0x2e7   :  { %v1657_v11 = vunpack.i.h.bf16 %v1655_v55  ;;  %v1656_v13 = vunpack.i.l.bf16 %v1655_v55  ;;  %v1662_v17 = vunpack.i.h.bf16 %v1660_v43  ;;  %v1661_v54 = vunpack.i.l.bf16 %v1660_v43 }
 0x2ee   :  { %v1645_v56 = vpop.permute.xlu1 %1644  ;;  %v1670_v0 = vpop.permute.xlu2 %1669 }
 0x2ef   :  { %v1647_v61 = vunpack.i.h.bf16 %v1645_v56  ;;  %v1646_v63 = vunpack.i.l.bf16 %v1645_v56  ;;  %v1675_v26 = vpop.permute.xlu0 %1674  ;;  %v1672_v35 = vunpack.i.h.bf16 %v1670_v0  ;;  %v1671_v28 = vunpack.i.l.bf16 %v1670_v0 }
 0x2f0   :  { %v1677_v38 = vunpack.i.h.bf16 %v1675_v26  ;;  %v1676_v44 = vunpack.i.l.bf16 %v1675_v26  ;;  %v2455_v56 = vshrl.u32 %v121_v32, 7  ;;  %v988_v26 = vld [vmem:[#allocation2] sm:$0xff] }
 0x2f1   :  { %1123 = vmatpush.msrb.mxu2 %v1647_v61  ;;  %1150 = vmatpush.msrb.mxu3 %v1646_v63  ;;  %v962_v61 = vperm.slane %v960_v47, 1  ;;  %v961_v63 = vperm.slane %v2451_v50, 3 }
 0x2f3   :  { %1124 = vmatpush.msrb.mxu2 %v1642_v24  ;;  %1151 = vmatpush.msrb.mxu3 %v1641_v40  ;;  %vm964_vm5 = vcmp.eq.s32.totalorder %v2455_v56, %v962_v61 }
 0x2f5   :  { %1125 = vmatpush.msrb.mxu2 %v1637_v1  ;;  %1152 = vmatpush.msrb.mxu3 %v1636_v3 }
 0x2f6   :  { %v1665_v10 = vpop.permute.xlu1 %1664  ;;  %v1685_v23 = vpop.permute.xlu2 %1684 }
 0x2f7   :  { %1126 = vmatpush.msrb.mxu2 %v1632_v5  ;;  %1153 = vmatpush.msrb.mxu3 %v1631_v9  ;;  %v1667_v19 = vunpack.i.h.bf16 %v1665_v10  ;;  %v1666_v22 = vunpack.i.l.bf16 %v1665_v10  ;;  %v1690_v52 = vpop.permute.xlu0 %1689  ;;  %v1687_v55 = vunpack.i.h.bf16 %v1685_v23  ;;  %v1686_v43 = vunpack.i.l.bf16 %v1685_v23 }
 0x2f8   :  { %v1692_v24 = vunpack.i.h.bf16 %v1690_v52  ;;  %v1691_v40 = vunpack.i.l.bf16 %v1690_v52  ;;  %v963_v9 = vperm.slane %v961_v63, 1 }
 0x2f9   :  { %1127 = vmatpush.msrb.mxu2 %v1657_v11  ;;  %1154 = vmatpush.msrb.mxu3 %v1656_v13  ;;  %v1736_v11 = vmov 1.0   ;;  %v929_v13 = vadd.s32 8, %v2455_v56 }
 0x2fa   :  { %vm965_vm6 = vcmp.eq.s32.totalorder %v2455_v56, %v963_v9 }
 0x2fb   :  { %1128 = vmatpush.msrb.mxu2 %v1662_v17  ;;  %1155 = vmatpush.msrb.mxu3 %v1661_v54  ;;  %vm966_vm7 = vcmp.eq.s32.totalorder %v929_v13, %v962_v61  ;;  %vm967_vm8 = vcmp.eq.s32.totalorder %v929_v13, %v963_v9 }
 0x2fd   :  { %1129 = vmatpush.msrb.mxu2 %v1667_v19  ;;  %1156 = vmatpush.msrb.mxu3 %v1666_v22 }
 0x2fe   :  { %v1680_v41 = vpop.permute.xlu1 %1679  ;;  %v1700_v0 = vpop.permute.xlu2 %1699 }
 0x2ff   :  { %1130 = vmatpush.msrb.mxu2 %v1672_v35  ;;  %1157 = vmatpush.msrb.mxu3 %v1671_v28  ;;  %v1682_v48 = vunpack.i.h.bf16 %v1680_v41  ;;  %v1681_v49 = vunpack.i.l.bf16 %v1680_v41  ;;  %v1701_v10 = vunpack.i.l.bf16 %v1700_v0  ;;  %v1702_v32 = vunpack.i.h.bf16 %v1700_v0  ;;  %v1313_v35 = vld [vmem:[%s2591_s2 + $0x18] sm:$0xff] }
 0x301   :  { %1131 = vmatpush.msrb.mxu2 %v1677_v38  ;;  %1158 = vmatpush.msrb.mxu3 %v1676_v44 }
 0x303   :  { %1132 = vmatpush.msrb.mxu2 %v1682_v48  ;;  %1159 = vmatpush.msrb.mxu3 %v1681_v49 }
 0x305   :  { %1133 = vmatpush.msrb.mxu2 %v1687_v55  ;;  %1160 = vmatpush.msrb.mxu3 %v1686_v43  ;;  %v990_v55 = vld [vmem:[#allocation2 + $0x10] sm:$0xff] }
 0x306   :  { %v1695_v1 = vpop.permute.xlu1 %1694 }
 0x307   :  { %v1697_v3 = vunpack.i.h.bf16 %v1695_v1  ;;  %v1696_v5 = vunpack.i.l.bf16 %v1695_v1  ;;  %1134 = vmatpush.msrb.mxu2 %v1692_v24  ;;  %1161 = vmatpush.msrb.mxu3 %v1691_v40  ;;  %v991_v1 = vld [vmem:[#allocation2 + $0x18] sm:$0xff] }
 0x309   :  { %1135 = vmatpush.msrb.mxu2 %v1697_v3  ;;  %1162 = vmatpush.msrb.mxu3 %v1696_v5 }
 0x30a   :  { %1526 = vmatmul.msk.f32.vlgmr.msrb.gmra.mxu2 %vm964_vm5, %v1736_v11 }
 0x30b   :  { %1178 = vmatpush.msra.mxu2 %v2289_v31  ;;  %1163 = vmatpush.msrb.mxu3 %v1701_v10  ;;  %v931_v31 = vadd.s32 24, %v2455_v56 }
 0x30d   :  { %1179 = vmatpush.msra.mxu2 %v2286_v30  ;;  %1164 = vmatpush.msrb.mxu3 %v1702_v32  ;;  %v930_v30 = vadd.s32 16, %v2455_v56  ;;  %vm970_vm11 = vcmp.eq.s32.totalorder %v931_v31, %v962_v61  ;;  %vm971_vm12 = vcmp.eq.s32.totalorder %v931_v31, %v963_v9 }
 0x30e   :  { %1530 = vmatmul.msk.f32.vlgmr.msrb.gmra.mxu3 %vm965_vm6, %v1736_v11  ;;  %vm1300_vm6 = vcmask 261120  }
 0x30f   :  { %1180 = vmatpush.msra.mxu2 %v2368_v14  ;;  %1207 = vmatpush.msra.mxu3 %v2371_v15  ;;  %vm968_vm9 = vcmp.eq.s32.totalorder %v930_v30, %v962_v61  ;;  %vm969_vm10 = vcmp.eq.s32.totalorder %v930_v30, %v963_v9  ;;  %v1321_v14 = vld [vmem:[%s2597_s8 + $0x18] sm:$0xff]  ;;  %v1251_v15 = vld [vmem:[%s2596_s7] sm:$0xff] }
 0x311   :  { %1181 = vmatpush.msra.mxu2 %v2345_v7  ;;  %1208 = vmatpush.msra.mxu3 %v2348_v8  ;;  %v1254_v8 = vld [vmem:[%s2596_s7 + $0x18] sm:$0xff] }
 0x312   :  { %1527 = vmatmul.msk.f32.gmra.mxu2 %vm966_vm7, %v1736_v11 }
 0x313   :  { %1182 = vmatpush.msra.mxu2 %v2326_v59  ;;  %1209 = vmatpush.msra.mxu3 %v2329_v60  ;;  %v1257_v59 = vld [vmem:[%s2596_s7 + $0x30] sm:$0xff] }
 0x315   :  { %1183 = vmatpush.msra.mxu2 %v2310_v51  ;;  %1210 = vmatpush.msra.mxu3 %v2313_v4  ;;  %v933_v51 = vperm.slane %v2451_v50, 2 }
 0x316   :  { %1531 = vmatmul.msk.f32.gmra.mxu3 %vm967_vm8, %v1736_v11 }
 0x317   :  { %1184 = vmatpush.msra.mxu2 %v2301_v45  ;;  %1211 = vmatpush.msra.mxu3 %v2304_v46  ;;  %v932_v45 = vperm.slane %v2451_v50, 0  ;;  %v935_v4 = vperm.slane %v933_v51, 0  ;;  %v989_v50 = vld [vmem:[#allocation2 + $0x8] sm:$0xff] }
 0x319   :  { %1185 = vmatpush.msra.mxu2 %v2398_v21  ;;  %1212 = vmatpush.msra.mxu3 %v2390_v34  ;;  %v934_v46 = vperm.slane %v932_v45, 0  ;;  %vm937_vm14 = vcmp.eq.s32.totalorder %v2455_v56, %v935_v4  ;;  %vm939_vm1 = vcmp.eq.s32.totalorder %v929_v13, %v935_v4  ;;  %vm941_vm3 = vcmp.eq.s32.totalorder %v930_v30, %v935_v4  ;;  %v1319_v34 = vld [vmem:[%s2597_s8 + $0x8] sm:$0xff] }
 0x31a   :  { %1528 = vmatmul.msk.f32.gmra.mxu2 %vm968_vm9, %v1736_v11  ;;  %vm943_vm5 = vcmp.eq.s32.totalorder %v931_v31, %v935_v4 }
 0x31b   :  { %1186 = vmatpush.msra.mxu2 %v2323_v57  ;;  %1213 = vmatpush.msra.mxu3 %v2319_v53  ;;  %vm936_vm13 = vcmp.eq.s32.totalorder %v2455_v56, %v934_v46  ;;  %vm938_vm15 = vcmp.eq.s32.totalorder %v929_v13, %v934_v46  ;;  %vm940_vm2 = vcmp.eq.s32.totalorder %v930_v30, %v934_v46  ;;  %v1258_v57 = vld [vmem:[%s2596_s7 + $0x38] sm:$0xff] }
 0x31c   :  { %vm942_vm4 = vcmp.eq.s32.totalorder %v931_v31, %v934_v46  ;;  %v1705_v31 = vld [vmem:[%s2598_s9] ss:$0 sm:$0xff]  ;;  %s1737_s9 = smov [#allocation3]  }
 0x31d   :  { %1187 = vmatpush.msra.mxu2 %v2364_v37  ;;  %1214 = vmatpush.msra.mxu3 %v2357_v2  ;;  %v1253_v2 = vld [vmem:[%s2596_s7 + $0x10] sm:$0xff]  ;;  %v1252_v37 = vld [vmem:[%s2596_s7 + $0x8] sm:$0xff]  ;;  %s1388_s28 = sshll.u32 %s1737_s9, 4  ;;  %s1389_s28 = int_to_ptr.vmem [resolvable:$true] %s1388_s28 }
 0x31e   :  { %1532 = vmatmul.msk.f32.gmra.mxu3 %vm969_vm10, %v1736_v11 }
 0x31f   :  { %1188 = vmatpush.msra.mxu2 %v2419_v29  ;;  %1215 = vmatpush.msra.mxu3 %v2411_v42  ;;  %v1311_v29 = vld [vmem:[%s2591_s2 + $0x8] sm:$0xff] }
 0x321   :  { %1189 = vmatpush.msra.mxu2 %v2342_v6  ;;  %1216 = vmatpush.msra.mxu3 %v2338_v58  ;;  %v1256_v58 = vld [vmem:[%s2596_s7 + $0x28] sm:$0xff]  ;;  %v1255_v6 = vld [vmem:[%s2596_s7 + $0x20] sm:$0xff] }
 0x322   :  { %1529 = vmatmul.msk.f32.gmra.mxu2 %vm970_vm11, %v1736_v11 }
 0x323   :  { %1190 = vmatpush.msra.mxu2 %v2394_v20  ;;  %1217 = vmatpush.msra.mxu3 %v2387_v18  ;;  %v1318_v20 = vld [vmem:[%s2597_s8] sm:$0xff] }
 0x325   :  { %1191 = vmatpush.msra.mxu2 %v2432_v27  ;;  %1218 = vmatpush.msra.mxu3 %v2428_v36 }
 0x326   :  { %1533 = vmatmul.msk.f32.gmra.mxu3 %vm971_vm12, %v1736_v11 }
 0x327   :  { %1192 = vmatpush.msra.mxu2 %v2375_v16  ;;  %1219 = vmatpush.msra.mxu3 %v2360_v12  ;;  %v1320_v16 = vld [vmem:[%s2597_s8 + $0x10] sm:$0xff] }
 0x329   :  { %1193 = vmatpush.msra.mxu2 %v2415_v62  ;;  %1220 = vmatpush.msra.mxu3 %v2407_v25  ;;  %v1310_v25 = vld [vmem:[%s2591_s2] sm:$0xff] }
 0x32a   :  { %1534 = vmatmul.msk.f32.vlgmr.msra.gmra.mxu2 %vm936_vm13, %v1736_v11 }
 0x32b   :  { %1221 = vmatpush.msra.mxu3 %v2439_v33  ;;  %1279 = vmatpush.msrb.mxu2 %v1258_v57  ;;  %v1312_v33 = vld [vmem:[%s2591_s2 + $0x10] sm:$0xff] }
 0x32d   :  { %1222 = vmatpush.msra.mxu3 %v2443_v39  ;;  %1280 = vmatpush.msrb.mxu2 %v1257_v59 }
 0x32e   :  { %1538 = vmatmul.msk.f32.vlgmr.msra.gmra.mxu3 %vm937_vm14, %v1736_v11 }
 0x32f   :  { %1281 = vmatpush.msrb.mxu2 %v1256_v58  ;;  %1347 = vmatpush.msrb.mxu3 %v1321_v14 }
 0x331   :  { %1282 = vmatpush.msrb.mxu2 %v1255_v6  ;;  %1348 = vmatpush.msrb.mxu3 %v1320_v16 }
 0x332   :  { %1535 = vmatmul.msk.f32.gmra.mxu2 %vm938_vm15, %v1736_v11 }
 0x333   :  { %1283 = vmatpush.msrb.mxu2 %v1254_v8  ;;  %1349 = vmatpush.msrb.mxu3 %v1319_v34 }
 0x335   :  { %1284 = vmatpush.msrb.mxu2 %v1253_v2  ;;  %1350 = vmatpush.msrb.mxu3 %v1318_v20 }
 0x336   :  { %1539 = vmatmul.msk.f32.gmra.mxu3 %vm939_vm1, %v1736_v11 }
 0x337   :  { %1285 = vmatpush.msrb.mxu2 %v1252_v37 }
 0x339   :  { %1286 = vmatpush.msrb.mxu2 %v1251_v15 }
 0x33a   :  { %1536 = vmatmul.msk.f32.gmra.mxu2 %vm940_vm2, %v1736_v11 }
 0x33e   :  { %1540 = vmatmul.msk.f32.gmra.mxu3 %vm941_vm3, %v1736_v11 }
 0x342   :  { %1537 = vmatmul.msk.f32.gmra.mxu2 %vm942_vm4, %v1736_v11 }
 0x346   :  { %1541 = vmatmul.msk.f32.gmra.mxu3 %vm943_vm5, %v1736_v11 }
 0x34e   :  { %1546 = vmatmul.msk.f32.vlgmr.msrb.gmra.mxu3 %vm1300_vm6, %v1310_v25 }
 0x356   :  { %1547 = vmatmul.msk.f32.gmra.mxu3 %vm1300_vm6, %v1311_v29 }
 0x35e   :  { %1548 = vmatmul.msk.f32.gmra.mxu3 %vm1300_vm6, %v1312_v33 }
 0x366   :  { %1549 = vmatmul.msk.f32.gmra.mxu3 %vm1300_vm6, %v1313_v35 }
 0x38d   :  { %v1137_v53 = vpop.f32.mrf.mxu2 }
 0x391   :  { %v1166_v60 = vpop.f32.mrf.mxu3 }
 0x392   :  { %v1167_v27 = vadd.f32 %v1166_v60, %v1137_v53 }
 0x395   :  { %v1140_v7 = vpop.f32.mrf.mxu2 }
 0x399   :  { %v1169_v12 = vpop.f32.mrf.mxu3 }
 0x39a   :  { %v1170_v23 = vadd.f32 %v1169_v12, %v1140_v7 }
 0x39d   :  { %v1143_v18 = vpop.f32.mrf.mxu2 }
 0x3a1   :  { %v1172_v21 = vpop.f32.mrf.mxu3 }
 0x3a2   :  { %v1173_v49 = vadd.f32 %v1172_v21, %v1143_v18 }
 0x3a5   :  { %v1146_v42 = vpop.f32.mrf.mxu2 }
 0x3a9   :  { %v1175_v62 = vpop.f32.mrf.mxu3 }
 0x3aa   :  { %v1176_v40 = vadd.f32 %v1175_v62, %v1146_v42 }
 0x3ad   :  { %v1195_v36 = vpop.f32.mrf.mxu2 }
 0x3ae   :  { %v1196_v39 = vadd.f32 %v1195_v36, %v1167_v27 }
 0x3b1   :  { %v1224_v17 = vpop.f32.mrf.mxu3 }
 0x3b2   :  { %v1225_v54 = vadd.f32 %v1224_v17, %v1196_v39 }
 0x3b4   :  { %v1236_v19 = vadd.f32 %v1225_v54, %v988_v26 }
 0x3b5   :  { %v1198_v22 = vpop.f32.mrf.mxu2 }
 0x3b6   :  { %1240 = vst.msk [vmem:[#allocation2] sm:$0xff] %vm84_vm0, %v1236_v19  ;;  %v1199_v28 = vadd.f32 %v1198_v22, %v1170_v23 }
 0x3b9   :  { %v1227_v41 = vpop.f32.mrf.mxu3 }
 0x3ba   :  { %v1228_v38 = vadd.f32 %v1227_v41, %v1199_v28 }
 0x3bc   :  { %v1237_v44 = vadd.f32 %v1228_v38, %v989_v50 }
 0x3bd   :  { %v1247_v47 = vld [vmem:[#allocation2] sm:$0xff]  ;;  %v1201_v48 = vpop.f32.mrf.mxu2 }
 0x3be   :  { %1241 = vst.msk [vmem:[#allocation2 + $0x8] sm:$0xff] %vm84_vm0, %v1237_v44  ;;  %1542 = vmatmul.msk.f32.vlgmr.msrb.gmra.mxu2 %vm84_vm0, %v1247_v47  ;;  %v1202_v52 = vadd.f32 %v1201_v48, %v1173_v49 }
 0x3c1   :  { %v1230_v43 = vpop.f32.mrf.mxu3 }
 0x3c2   :  { %v1231_v56 = vadd.f32 %v1230_v43, %v1202_v52 }
 0x3c4   :  { %v1238_v61 = vadd.f32 %v1231_v56, %v990_v55 }
 0x3c5   :  { %v1248_v63 = vld [vmem:[#allocation2 + $0x8] sm:$0xff]  ;;  %v1204_v24 = vpop.f32.mrf.mxu2 }
 0x3c6   :  { %1242 = vst.msk [vmem:[#allocation2 + $0x10] sm:$0xff] %vm84_vm0, %v1238_v61  ;;  %1543 = vmatmul.msk.f32.gmra.mxu2 %vm84_vm0, %v1248_v63  ;;  %v1205_v0 = vadd.f32 %v1204_v24, %v1176_v40 }
 0x3c9   :  { %v1233_v3 = vpop.f32.mrf.mxu3 }
 0x3ca   :  { %v1234_v5 = vadd.f32 %v1233_v3, %v1205_v0 }
 0x3cc   :  { %v1239_v9 = vadd.f32 %v1234_v5, %v991_v1 }
 0x3cd   :  { %v1249_v10 = vld [vmem:[#allocation2 + $0x10] sm:$0xff] }
 0x3ce   :  { %1243 = vst.msk [vmem:[#allocation2 + $0x18] sm:$0xff] %vm84_vm0, %v1239_v9  ;;  %1544 = vmatmul.msk.f32.gmra.mxu2 %vm84_vm0, %v1249_v10 }
 0x3d1   :  { %v1352_v11 = vpop.f32.mrf.mxu3 }
 0x3d2   :  { %v1364_v30 = vadd.f32 %v1352_v11, %v1310_v25 }
 0x3d4   :  { %v1372_v46 = vadd.f32 %v1705_v31, %v1364_v30 }
 0x3d5   :  { %v1250_v32 = vld [vmem:[#allocation2 + $0x18] sm:$0xff] }
 0x3d6   :  { %1545 = vmatmul.msk.f32.gmra.mxu2 %vm84_vm0, %v1250_v32 }
 0x3d9   :  { %v1355_v45 = vpop.f32.mrf.mxu3 }
 0x3da   :  { %v1365_v57 = vadd.f32 %v1355_v45, %v1311_v29 }
 0x3dc   :  { %v1373_v60 = vadd.f32 %v1705_v31, %v1365_v57 }
 0x3e1   :  { %v1358_v59 = vpop.f32.mrf.mxu3 }
 0x3e2   :  { %v1366_v8 = vadd.f32 %v1358_v59, %v1312_v33 }
 0x3e4   :  { %v1374_v2 = vadd.f32 %v1705_v31, %v1366_v8 }
 0x3e9   :  { %v1361_v12 = vpop.f32.mrf.mxu3 }
 0x3ea   :  { %v1367_v16 = vadd.f32 %v1361_v12, %v1313_v35 }
 0x3ec   :  { %v1375_v18 = vadd.f32 %v1705_v31, %v1367_v16 }
 0x441   :  { %v1288_v13 = vpop.f32.mrf.mxu2 }
 0x442   :  { %1301 = vst.msk [vmem:[#allocation3] sm:$0xff] %vm1300_vm6, %v1288_v13 }
 0x449   :  { %v1314_v51 = vld [vmem:[#allocation3] sm:$0xff]  ;;  %v1291_v4 = vpop.f32.mrf.mxu2 }
 0x44a   :  { %v1376_v53 = vadd.f32 %v1372_v46, %v1314_v51  ;;  %1302 = vst.msk [vmem:[#allocation3 + $0x8] sm:$0xff] %vm1300_vm6, %v1291_v4 }
 0x44c   :  { %1380 = vst.msk [vmem:[#allocation3] sm:$0xff] %vm1300_vm6, %v1376_v53 }
 0x451   :  { %v1315_v58 = vld [vmem:[#allocation3 + $0x8] sm:$0xff]  ;;  %v1294_v6 = vpop.f32.mrf.mxu2 }
 0x452   :  { %v1377_v7 = vadd.f32 %v1373_v60, %v1315_v58  ;;  %1303 = vst.msk [vmem:[#allocation3 + $0x10] sm:$0xff] %vm1300_vm6, %v1294_v6 }
 0x454   :  { %1381 = vst.msk [vmem:[#allocation3 + $0x8] sm:$0xff] %vm1300_vm6, %v1377_v7 }
 0x459   :  { %v1316_v37 = vld [vmem:[#allocation3 + $0x10] sm:$0xff]  ;;  %v1297_v14 = vpop.f32.mrf.mxu2 }
 0x45a   :  { %v1378_v15 = vadd.f32 %v1374_v2, %v1316_v37  ;;  %1304 = vst.msk [vmem:[#allocation3 + $0x18] sm:$0xff] %vm1300_vm6, %v1297_v14 }
 0x45c   :  { %1382 = vst.msk [vmem:[#allocation3 + $0x10] sm:$0xff] %vm1300_vm6, %v1378_v15 }
 0x461   :  { %v1317_v34 = vld [vmem:[#allocation3 + $0x18] sm:$0xff] }
 0x462   :  { %v1379_v20 = vadd.f32 %v1375_v18, %v1317_v34 }
 0x464   :  { %1383 = vst.msk [vmem:[#allocation3 + $0x18] sm:$0xff] %vm1300_vm6, %v1379_v20 }
 0x465   :  { %1396 = dma.vmem_to_hbm [thread:$0]  %s1389_s28, 512, %s1391_s11, [#allocation4], %s1738_s0, %s1738_s0, %s1739_s12  }
 0x466   :  { %1730 = dma.done.wait [#allocation4], 512  }
 0x467   :  { %1731 = vsyncadd [#allocation4], 4294966784 }
 0x468   :  { %1401 = vsyncpa [#allocation4], 1 }

</bundles_post_ra>
